<compile_context>
chip_gen: v7x
topology: tpu7x:2x2x1
jax: 0.10.0
libtpu: 0.0.40
codegen_flags: <defaults>
</compile_context>

<pallas_src>
import functools

import jax
import jax.numpy as jnp
from jax.experimental import pallas as pl
from jax.experimental.pallas import tpu as pltpu

LANES = 128                      # vreg lane width
SUBLANE = 16                     # bf16 sublane packing (2nd-minor alignment)
TM_TARGET = 512                  # max rows per M tile (multiple of SUBLANE)
VMEM_LIMIT = 32 * 1024 * 1024    # explicit scoped-VMEM limit (safe on v5e/v6e/v7x)


def _round_up(x, m):
    return (x + m - 1) // m * m


# ----------------------------- Pallas kernel -------------------------------


def _fused_matmul_kernel(x_ref, w_ref, b_ref, o_ref, *, relu, n_pool):
    """One (tm, 128) output tile of  relu( max_p(x[p] @ w) + b ).

    The n_pool pool-window variants live on the leading axis of the patch
    block, so the running max happens in registers as MXU results stream out:
    no f32 VMEM accumulator RMW, no init pass, no extra grid steps.  Bias +
    optional ReLU + downcast happen once; the store is a full 128-lane vst.
    """
    w = w_ref[...]
    z = jnp.dot(x_ref[0], w, preferred_element_type=jnp.float32)
    for p in range(1, n_pool):
        z = jnp.maximum(z, jnp.dot(x_ref[p], w, preferred_element_type=jnp.float32))
    out = z + b_ref[...]                      # f32 epilogue
    if relu:
        out = jnp.maximum(out, 0.0)
    o_ref[...] = out.astype(o_ref.dtype)


def fused_matmul_max(patches, w, b, *, relu, out_dtype):
    """patches: (P, G, Kpad) bf16; w: (Kpad, Npad) bf16; b: (Npad,) f32.

    Returns (G, Npad) out_dtype = relu?( max_p(patches[p] @ w) + b ).
    """
    P, G, Kpad = patches.shape
    Npad = w.shape[1]
    assert Npad % LANES == 0 and Kpad % SUBLANE == 0

    # Split M into >=2 tiles whenever possible so both TensorCores get work
    # on v7x; cap at TM_TARGET for VMEM.
    tm = min(TM_TARGET, _round_up((G + 1) // 2, SUBLANE))
    g_pad = _round_up(G, tm)
    if g_pad != G:
        patches = jnp.pad(patches, ((0, 0), (0, g_pad - G), (0, 0)))
    m_tiles = g_pad // tm

    kernel = functools.partial(_fused_matmul_kernel, relu=relu, n_pool=P)
    grid_spec = pltpu.PrefetchScalarGridSpec(
        num_scalar_prefetch=0,
        grid=(m_tiles,),
        in_specs=[
            pl.BlockSpec((P, tm, Kpad), lambda i: (0, i, 0)),   # patches tile
            pl.BlockSpec((Kpad, Npad), lambda i: (0, 0)),       # weights (resident)
            pl.BlockSpec((1, Npad), lambda i: (0, 0)),          # bias
        ],
        out_specs=pl.BlockSpec((tm, Npad), lambda i: (i, 0)),
    )
    cost = pl.CostEstimate(
        flops=2 * P * g_pad * Kpad * Npad,
        transcendentals=0,
        bytes_accessed=(P * g_pad * Kpad * 2 + Kpad * Npad * 2 + Npad * 4
                        + g_pad * Npad * jnp.dtype(out_dtype).itemsize),
    )
    out = pl.pallas_call(
        kernel,
        out_shape=jax.ShapeDtypeStruct((g_pad, Npad), out_dtype),
        grid_spec=grid_spec,
        compiler_params=pltpu.CompilerParams(
            dimension_semantics=("parallel",),
            vmem_limit_bytes=VMEM_LIMIT,
        ),
        cost_estimate=cost,
    )(patches, w, b.reshape(1, Npad))
    return out[:G]


# ------------------------------- glue (JAX) --------------------------------


def im2col_pooled(x, k, pad):
    """x: (B, H, W, C) NHWC (even H, W) -> (4, B*Hh*Wh, k*k*C).

    Axis 0 enumerates the 2x2 pool-window elements (dy, dx); rows are ordered
    (b, hh, wh); features are ordered (kh, kw, c) to match w.reshape(k*k*C, Cout).
    """
    B, H, W, C = x.shape
    Hh, Wh = H // 2, W // 2
    xp = jnp.pad(x, ((0, 0), (pad, pad), (pad, pad), (0, 0)))
    # Build the stride-1 tap tensor once (k*k slices + one stack), then carve
    # the four pool-window variants with strided slices.  Fewer / denser XLA
    # ops than the previous 4*k*k narrow concats (Cin=1 case in conv1).
    taps = jnp.stack(
        [xp[:, kh:kh + H, kw:kw + W, :] for kh in range(k) for kw in range(k)],
        axis=3,
    )                                             # (B, H, W, k*k, C)
    taps = taps.reshape(B, H, W, k * k * C)       # feature order (kh, kw, c)
    groups = [
        taps[:, dy::2, dx::2, :].reshape(B * Hh * Wh, k * k * C)
        for dy in range(2) for dx in range(2)
    ]
    return jnp.stack(groups, axis=0)


def conv_relu_pool(x, w, b):
    """Conv2d(k, stride=1, pad=k//2) + ReLU + MaxPool2d(2), fully fused.

    x: (B, H, W, Cin) NHWC;  w: (k, k, Cin, Cout);  b: (Cout,)
    returns (B, H//2, W//2, Cout) bf16.
    """
    B, H, W, Cin = x.shape
    k = w.shape[0]
    Cout = w.shape[-1]
    Hh, Wh = H // 2, W // 2
    K = k * k * Cin
    Kpad = _round_up(K, SUBLANE)       # conv1: 25 -> 32
    Npad = _round_up(Cout, LANES)      # 16 / 32 -> 128 lanes

    patches = im2col_pooled(x, k, k // 2).astype(jnp.bfloat16)   # (4, G, K)
    if Kpad != K:
        patches = jnp.pad(patches, ((0, 0), (0, 0), (0, Kpad - K)))
    w2 = jnp.pad(w.reshape(K, Cout).astype(jnp.bfloat16),
                 ((0, Kpad - K), (0, Npad - Cout)))              # (Kpad, 128)
    b2 = jnp.pad(b.astype(jnp.float32), (0, Npad - Cout))        # (128,)

    y = fused_matmul_max(patches, w2, b2, relu=True, out_dtype=jnp.bfloat16)
    # Channel slice fuses into the next layer's patch construction under jit.
    return y[:, :Cout].reshape(B, Hh, Wh, Cout)


def linear(x, w, b):
    """x: (M, K); w: (K, N); b: (N,) -> (M, N) f32 (no activation)."""
    M, K = x.shape
    N = w.shape[1]
    Kpad = _round_up(K, SUBLANE)
    Npad = _round_up(N, LANES)         # 10 -> 128 lanes
    xb = x.astype(jnp.bfloat16)
    if Kpad != K:
        xb = jnp.pad(xb, ((0, 0), (0, Kpad - K)))
    wp = jnp.pad(w.astype(jnp.bfloat16), ((0, Kpad - K), (0, Npad - N)))
    bp = jnp.pad(b.astype(jnp.float32), (0, Npad - N))
    y = fused_matmul_max(xb[None], wp, bp, relu=False, out_dtype=jnp.float32)
    return y[:, :N]


def cnn_forward(x_nchw, params):
    """Forward pass matching the PyTorch CNN.  x_nchw: (B, 1, 28, 28)."""
    x = jnp.transpose(x_nchw, (0, 2, 3, 1)).astype(jnp.bfloat16)   # NCHW -> NHWC
    x = conv_relu_pool(x, params["w1"], params["b1"])              # (B, 14, 14, 16)
    x = conv_relu_pool(x, params["w2"], params["b2"])              # (B, 7, 7, 32)
    B, Hh, Wh, C = x.shape
    # PyTorch flattens NCHW -> (c, h, w).  Instead of transposing the
    # activation every forward pass, permute w_out's rows (c,h,w) -> (h,w,c)
    # once and flatten x in its native NHWC order: identical logits.
    x_flat = x.reshape(B, Hh * Wh * C)
    w_out = params["w_out"].reshape(C, Hh, Wh, -1).transpose(1, 2, 0, 3)
    w_out = w_out.reshape(C * Hh * Wh, -1)
    return linear(x_flat, w_out, params["b_out"])                  # (B, 10) f32


# --------------------------- deterministic init -----------------------------


def init_params(key):
    def uniform(key, shape, fan_in):
        bound = 1.0 / jnp.sqrt(float(fan_in))
        return jax.random.uniform(key, shape, jnp.float32, -bound, bound)

    k1, k2, k3, k4, k5, k6 = jax.random.split(key, 6)
    return {
        # conv1: Conv2d(1, 16, 5, 1, 2)  -> stored (kh, kw, Cin, Cout)
        "w1": uniform(k1, (5, 5, 1, 16), 1 * 5 * 5),
        "b1": uniform(k2, (16,), 1 * 5 * 5),
        # conv2: Conv2d(16, 32, 5, 1, 2)
        "w2": uniform(k3, (5, 5, 16, 32), 16 * 5 * 5),
        "b2": uniform(k4, (32,), 16 * 5 * 5),
        # out: Linear(32*7*7, 10)        -> stored (in, out), PyTorch (c,h,w) row order
        "w_out": uniform(k5, (32 * 7 * 7, 10), 32 * 7 * 7),
        "b_out": uniform(k6, (10,), 32 * 7 * 7),
    }


# ---------------------------------- main ------------------------------------

if __name__ == "__main__":
    root = jax.random.PRNGKey(0)
    k_params, k_x = jax.random.split(root)
    params = init_params(k_params)

    # Spatial size must be 28x28 so that the flatten matches Linear(32*7*7, 10).
    x = jax.random.normal(k_x, (2, 1, 28, 28), dtype=jnp.float32)

    out = jax.jit(cnn_forward)(x, params)
    out = jax.block_until_ready(out)
    assert out.shape == (2, 10), out.shape
    assert out.dtype == jnp.float32
    print("KERNEL_OK")
</pallas_src>

<mosaic_0001>
module attributes {stable_mosaic.version = 11 : i64} {
  func.func @_fused_matmul_kernel(%arg0: i32, %arg1: memref<4x208x32xbf16, #tpu.memory_space<vmem>>, %arg2: memref<32x128xbf16, #tpu.memory_space<vmem>>, %arg3: memref<1x128xf32, #tpu.memory_space<vmem>>, %arg4: memref<208x128xbf16, #tpu.memory_space<vmem>>) attributes {dimension_semantics = [#tpu.dimension_semantics<parallel>], iteration_bounds = array<i64: 2>, scalar_prefetch = 0 : i64, scratch_operands = 0 : i64, tpu.core_type = #tpu.core_type<tc>, window_params = [{transform_indices = @transform_0, window_bounds = array<i64: 4, 208, 32>}, {pipeline_mode = #tpu.pipeline_mode<synchronous>, transform_indices = @transform_1, window_bounds = array<i64: 32, 128>}, {pipeline_mode = #tpu.pipeline_mode<synchronous>, transform_indices = @transform_2, window_bounds = array<i64: 1, 128>}, {transform_indices = @transform_3, window_bounds = array<i64: 208, 128>}]} {
    %c0 = arith.constant 0 : index
    %c0_0 = arith.constant 0 : index
    %0 = vector.load %arg2[%c0, %c0_0] : memref<32x128xbf16, #tpu.memory_space<vmem>>, vector<32x128xbf16>
    %c0_1 = arith.constant 0 : index
    %c0_2 = arith.constant 0 : index
    %c0_3 = arith.constant 0 : index
    %1 = vector.load %arg1[%c0_1, %c0_2, %c0_3] : memref<4x208x32xbf16, #tpu.memory_space<vmem>>, vector<1x208x32xbf16>
    %2 = vector.shape_cast %1 : vector<1x208x32xbf16> to vector<208x32xbf16>
    %cst = arith.constant dense<0.000000e+00> : vector<208x128xf32>
    %3 = tpu.matmul %2, %0, %cst {dimension_numbers = #tpu.dot_dimension_numbers<[1], [0], [0], [1], [0, 0, 1, 1], [], []>} : vector<208x32xbf16>, vector<32x128xbf16>, vector<208x128xf32> -> vector<208x128xf32>
    %c1 = arith.constant 1 : index
    %c0_4 = arith.constant 0 : index
    %c0_5 = arith.constant 0 : index
    %4 = vector.load %arg1[%c1, %c0_4, %c0_5] : memref<4x208x32xbf16, #tpu.memory_space<vmem>>, vector<1x208x32xbf16>
    %5 = vector.shape_cast %4 : vector<1x208x32xbf16> to vector<208x32xbf16>
    %cst_6 = arith.constant dense<0.000000e+00> : vector<208x128xf32>
    %6 = tpu.matmul %5, %0, %cst_6 {dimension_numbers = #tpu.dot_dimension_numbers<[1], [0], [0], [1], [0, 0, 1, 1], [], []>} : vector<208x32xbf16>, vector<32x128xbf16>, vector<208x128xf32> -> vector<208x128xf32>
    %7 = arith.maximumf %3, %6 : vector<208x128xf32>
    %c2 = arith.constant 2 : index
    %c0_7 = arith.constant 0 : index
    %c0_8 = arith.constant 0 : index
    %8 = vector.load %arg1[%c2, %c0_7, %c0_8] : memref<4x208x32xbf16, #tpu.memory_space<vmem>>, vector<1x208x32xbf16>
    %9 = vector.shape_cast %8 : vector<1x208x32xbf16> to vector<208x32xbf16>
    %cst_9 = arith.constant dense<0.000000e+00> : vector<208x128xf32>
    %10 = tpu.matmul %9, %0, %cst_9 {dimension_numbers = #tpu.dot_dimension_numbers<[1], [0], [0], [1], [0, 0, 1, 1], [], []>} : vector<208x32xbf16>, vector<32x128xbf16>, vector<208x128xf32> -> vector<208x128xf32>
    %11 = arith.maximumf %7, %10 : vector<208x128xf32>
    %c3 = arith.constant 3 : index
    %c0_10 = arith.constant 0 : index
    %c0_11 = arith.constant 0 : index
    %12 = vector.load %arg1[%c3, %c0_10, %c0_11] : memref<4x208x32xbf16, #tpu.memory_space<vmem>>, vector<1x208x32xbf16>
    %13 = vector.shape_cast %12 : vector<1x208x32xbf16> to vector<208x32xbf16>
    %cst_12 = arith.constant dense<0.000000e+00> : vector<208x128xf32>
    %14 = tpu.matmul %13, %0, %cst_12 {dimension_numbers = #tpu.dot_dimension_numbers<[1], [0], [0], [1], [0, 0, 1, 1], [], []>} : vector<208x32xbf16>, vector<32x128xbf16>, vector<208x128xf32> -> vector<208x128xf32>
    %15 = arith.maximumf %11, %14 : vector<208x128xf32>
    %c0_13 = arith.constant 0 : index
    %c0_14 = arith.constant 0 : index
    %16 = vector.load %arg3[%c0_13, %c0_14] : memref<1x128xf32, #tpu.memory_space<vmem>>, vector<1x128xf32>
    %17 = vector.broadcast %16 : vector<1x128xf32> to vector<208x128xf32>
    %18 = arith.addf %15, %17 : vector<208x128xf32>
    %cst_15 = arith.constant 0.000000e+00 : f32
    %19 = vector.broadcast %cst_15 : f32 to vector<208x128xf32>
    %20 = arith.maximumf %18, %19 : vector<208x128xf32>
    %21 = arith.truncf %20 : vector<208x128xf32> to vector<208x128xbf16>
    %c0_16 = arith.constant 0 : index
    %c0_17 = arith.constant 0 : index
    %22 = vector.load %arg4[%c0_16, %c0_17] : memref<208x128xbf16, #tpu.memory_space<vmem>>, vector<208x128xbf16>
    tpu.vector_store %arg4[%c0_16, %c0_17], %21 {strides = array<i32>} : memref<208x128xbf16, #tpu.memory_space<vmem>>, vector<208x128xbf16>,
    return
  }
  func.func @transform_0(%arg0: i32) -> (i32, i32, i32) {
    %c0_i32 = arith.constant 0 : i32
    %c0_i32_0 = arith.constant 0 : i32
    %c0_i32_1 = arith.constant 0 : i32
    return %c0_i32, %arg0, %c0_i32_0 : i32, i32, i32
  }
  func.func @transform_1(%arg0: i32) -> (i32, i32) {
    %c0_i32 = arith.constant 0 : i32
    %c0_i32_0 = arith.constant 0 : i32
    %c0_i32_1 = arith.constant 0 : i32
    return %c0_i32, %c0_i32_0 : i32, i32
  }
  func.func @transform_2(%arg0: i32) -> (i32, i32) {
    %c0_i32 = arith.constant 0 : i32
    %c0_i32_0 = arith.constant 0 : i32
    %c0_i32_1 = arith.constant 0 : i32
    return %c0_i32, %c0_i32_0 : i32, i32
  }
  func.func @transform_3(%arg0: i32) -> (i32, i32) {
    %c0_i32 = arith.constant 0 : i32
    %c0_i32_0 = arith.constant 0 : i32
    return %arg0, %c0_i32 : i32, i32
  }
}

module attributes {stable_mosaic.version = 11 : i64} {
  func.func @_fused_matmul_kernel(%arg0: i32, %arg1: memref<4x64x400xbf16, #tpu.memory_space<vmem>>, %arg2: memref<400x128xbf16, #tpu.memory_space<vmem>>, %arg3: memref<1x128xf32, #tpu.memory_space<vmem>>, %arg4: memref<64x128xbf16, #tpu.memory_space<vmem>>) attributes {dimension_semantics = [#tpu.dimension_semantics<parallel>], iteration_bounds = array<i64: 2>, scalar_prefetch = 0 : i64, scratch_operands = 0 : i64, tpu.core_type = #tpu.core_type<tc>, window_params = [{transform_indices = @transform_0, window_bounds = array<i64: 4, 64, 400>}, {pipeline_mode = #tpu.pipeline_mode<synchronous>, transform_indices = @transform_1, window_bounds = array<i64: 400, 128>}, {pipeline_mode = #tpu.pipeline_mode<synchronous>, transform_indices = @transform_2, window_bounds = array<i64: 1, 128>}, {transform_indices = @transform_3, window_bounds = array<i64: 64, 128>}]} {
    %c0 = arith.constant 0 : index
    %c0_0 = arith.constant 0 : index
    %0 = vector.load %arg2[%c0, %c0_0] : memref<400x128xbf16, #tpu.memory_space<vmem>>, vector<400x128xbf16>
    %c0_1 = arith.constant 0 : index
    %c0_2 = arith.constant 0 : index
    %c0_3 = arith.constant 0 : index
    %1 = vector.load %arg1[%c0_1, %c0_2, %c0_3] : memref<4x64x400xbf16, #tpu.memory_space<vmem>>, vector<1x64x400xbf16>
    %2 = vector.shape_cast %1 : vector<1x64x400xbf16> to vector<64x400xbf16>
    %cst = arith.constant dense<0.000000e+00> : vector<64x128xf32>
    %3 = tpu.matmul %2, %0, %cst {dimension_numbers = #tpu.dot_dimension_numbers<[1], [0], [0], [1], [0, 0, 1, 1], [], []>} : vector<64x400xbf16>, vector<400x128xbf16>, vector<64x128xf32> -> vector<64x128xf32>
    %c1 = arith.constant 1 : index
    %c0_4 = arith.constant 0 : index
    %c0_5 = arith.constant 0 : index
    %4 = vector.load %arg1[%c1, %c0_4, %c0_5] : memref<4x64x400xbf16, #tpu.memory_space<vmem>>, vector<1x64x400xbf16>
    %5 = vector.shape_cast %4 : vector<1x64x400xbf16> to vector<64x400xbf16>
    %cst_6 = arith.constant dense<0.000000e+00> : vector<64x128xf32>
    %6 = tpu.matmul %5, %0, %cst_6 {dimension_numbers = #tpu.dot_dimension_numbers<[1], [0], [0], [1], [0, 0, 1, 1], [], []>} : vector<64x400xbf16>, vector<400x128xbf16>, vector<64x128xf32> -> vector<64x128xf32>
    %7 = arith.maximumf %3, %6 : vector<64x128xf32>
    %c2 = arith.constant 2 : index
    %c0_7 = arith.constant 0 : index
    %c0_8 = arith.constant 0 : index
    %8 = vector.load %arg1[%c2, %c0_7, %c0_8] : memref<4x64x400xbf16, #tpu.memory_space<vmem>>, vector<1x64x400xbf16>
    %9 = vector.shape_cast %8 : vector<1x64x400xbf16> to vector<64x400xbf16>
    %cst_9 = arith.constant dense<0.000000e+00> : vector<64x128xf32>
    %10 = tpu.matmul %9, %0, %cst_9 {dimension_numbers = #tpu.dot_dimension_numbers<[1], [0], [0], [1], [0, 0, 1, 1], [], []>} : vector<64x400xbf16>, vector<400x128xbf16>, vector<64x128xf32> -> vector<64x128xf32>
    %11 = arith.maximumf %7, %10 : vector<64x128xf32>
    %c3 = arith.constant 3 : index
    %c0_10 = arith.constant 0 : index
    %c0_11 = arith.constant 0 : index
    %12 = vector.load %arg1[%c3, %c0_10, %c0_11] : memref<4x64x400xbf16, #tpu.memory_space<vmem>>, vector<1x64x400xbf16>
    %13 = vector.shape_cast %12 : vector<1x64x400xbf16> to vector<64x400xbf16>
    %cst_12 = arith.constant dense<0.000000e+00> : vector<64x128xf32>
    %14 = tpu.matmul %13, %0, %cst_12 {dimension_numbers = #tpu.dot_dimension_numbers<[1], [0], [0], [1], [0, 0, 1, 1], [], []>} : vector<64x400xbf16>, vector<400x128xbf16>, vector<64x128xf32> -> vector<64x128xf32>
    %15 = arith.maximumf %11, %14 : vector<64x128xf32>
    %c0_13 = arith.constant 0 : index
    %c0_14 = arith.constant 0 : index
    %16 = vector.load %arg3[%c0_13, %c0_14] : memref<1x128xf32, #tpu.memory_space<vmem>>, vector<1x128xf32>
    %17 = vector.broadcast %16 : vector<1x128xf32> to vector<64x128xf32>
    %18 = arith.addf %15, %17 : vector<64x128xf32>
    %cst_15 = arith.constant 0.000000e+00 : f32
    %19 = vector.broadcast %cst_15 : f32 to vector<64x128xf32>
    %20 = arith.maximumf %18, %19 : vector<64x128xf32>
    %21 = arith.truncf %20 : vector<64x128xf32> to vector<64x128xbf16>
    %c0_16 = arith.constant 0 : index
    %c0_17 = arith.constant 0 : index
    %22 = vector.load %arg4[%c0_16, %c0_17] : memref<64x128xbf16, #tpu.memory_space<vmem>>, vector<64x128xbf16>
    tpu.vector_store %arg4[%c0_16, %c0_17], %21 {strides = array<i32>} : memref<64x128xbf16, #tpu.memory_space<vmem>>, vector<64x128xbf16>,
    return
  }
  func.func @transform_0(%arg0: i32) -> (i32, i32, i32) {
    %c0_i32 = arith.constant 0 : i32
    %c0_i32_0 = arith.constant 0 : i32
    %c0_i32_1 = arith.constant 0 : i32
    return %c0_i32, %arg0, %c0_i32_0 : i32, i32, i32
  }
  func.func @transform_1(%arg0: i32) -> (i32, i32) {
    %c0_i32 = arith.constant 0 : i32
    %c0_i32_0 = arith.constant 0 : i32
    %c0_i32_1 = arith.constant 0 : i32
    return %c0_i32, %c0_i32_0 : i32, i32
  }
  func.func @transform_2(%arg0: i32) -> (i32, i32) {
    %c0_i32 = arith.constant 0 : i32
    %c0_i32_0 = arith.constant 0 : i32
    %c0_i32_1 = arith.constant 0 : i32
    return %c0_i32, %c0_i32_0 : i32, i32
  }
  func.func @transform_3(%arg0: i32) -> (i32, i32) {
    %c0_i32 = arith.constant 0 : i32
    %c0_i32_0 = arith.constant 0 : i32
    return %arg0, %c0_i32 : i32, i32
  }
}

module attributes {stable_mosaic.version = 11 : i64} {
  func.func @_fused_matmul_kernel(%arg0: i32, %arg1: memref<1x16x1568xbf16, #tpu.memory_space<vmem>>, %arg2: memref<1568x128xbf16, #tpu.memory_space<vmem>>, %arg3: memref<1x128xf32, #tpu.memory_space<vmem>>, %arg4: memref<16x128xf32, #tpu.memory_space<vmem>>) attributes {dimension_semantics = [#tpu.dimension_semantics<parallel>], iteration_bounds = array<i64: 1>, scalar_prefetch = 0 : i64, scratch_operands = 0 : i64, tpu.core_type = #tpu.core_type<tc>, window_params = [{transform_indices = @transform_0, window_bounds = array<i64: 1, 16, 1568>}, {pipeline_mode = #tpu.pipeline_mode<synchronous>, transform_indices = @transform_1, window_bounds = array<i64: 1568, 128>}, {pipeline_mode = #tpu.pipeline_mode<synchronous>, transform_indices = @transform_2, window_bounds = array<i64: 1, 128>}, {transform_indices = @transform_3, window_bounds = array<i64: 16, 128>}]} {
    %c0 = arith.constant 0 : index
    %c0_0 = arith.constant 0 : index
    %0 = vector.load %arg2[%c0, %c0_0] : memref<1568x128xbf16, #tpu.memory_space<vmem>>, vector<1568x128xbf16>
    %c0_1 = arith.constant 0 : index
    %c0_2 = arith.constant 0 : index
    %c0_3 = arith.constant 0 : index
    %1 = vector.load %arg1[%c0_1, %c0_2, %c0_3] : memref<1x16x1568xbf16, #tpu.memory_space<vmem>>, vector<1x16x1568xbf16>
    %2 = vector.shape_cast %1 : vector<1x16x1568xbf16> to vector<16x1568xbf16>
    %cst = arith.constant dense<0.000000e+00> : vector<16x128xf32>
    %3 = tpu.matmul %2, %0, %cst {dimension_numbers = #tpu.dot_dimension_numbers<[1], [0], [0], [1], [0, 0, 1, 1], [], []>} : vector<16x1568xbf16>, vector<1568x128xbf16>, vector<16x128xf32> -> vector<16x128xf32>
    %c0_4 = arith.constant 0 : index
    %c0_5 = arith.constant 0 : index
    %4 = vector.load %arg3[%c0_4, %c0_5] : memref<1x128xf32, #tpu.memory_space<vmem>>, vector<1x128xf32>
    %5 = vector.broadcast %4 : vector<1x128xf32> to vector<16x128xf32>
    %6 = arith.addf %3, %5 : vector<16x128xf32>
    %c0_6 = arith.constant 0 : index
    %c0_7 = arith.constant 0 : index
    %7 = vector.load %arg4[%c0_6, %c0_7] : memref<16x128xf32, #tpu.memory_space<vmem>>, vector<16x128xf32>
    tpu.vector_store %arg4[%c0_6, %c0_7], %6 {strides = array<i32>} : memref<16x128xf32, #tpu.memory_space<vmem>>, vector<16x128xf32>,
    return
  }
  func.func @transform_0(%arg0: i32) -> (i32, i32, i32) {
    %c0_i32 = arith.constant 0 : i32
    %c0_i32_0 = arith.constant 0 : i32
    %c0_i32_1 = arith.constant 0 : i32
    return %c0_i32, %arg0, %c0_i32_0 : i32, i32, i32
  }
  func.func @transform_1(%arg0: i32) -> (i32, i32) {
    %c0_i32 = arith.constant 0 : i32
    %c0_i32_0 = arith.constant 0 : i32
    %c0_i32_1 = arith.constant 0 : i32
    return %c0_i32, %c0_i32_0 : i32, i32
  }
  func.func @transform_2(%arg0: i32) -> (i32, i32) {
    %c0_i32 = arith.constant 0 : i32
    %c0_i32_0 = arith.constant 0 : i32
    %c0_i32_1 = arith.constant 0 : i32
    return %c0_i32, %c0_i32_0 : i32, i32
  }
  func.func @transform_3(%arg0: i32) -> (i32, i32) {
    %c0_i32 = arith.constant 0 : i32
    %c0_i32_0 = arith.constant 0 : i32
    return %arg0, %c0_i32 : i32, i32
  }
}

</mosaic_0001>

<bundles_post_ra>
// kernel: cnn_forward.3
= control target key start
LH: loop header
LB: loop body
LE: loop exit
PB: predicated region body
PF: predicated region fallthrough
CT: control target
= control target key end

     0   :  { %s2781_s12 = smov 0   ;;  %s2783_s13 = smov 0   ;;  %s3445_s0 = inlined_call_operand.vmem [shape: bf16[4,416,32], index: 0, kind: input, shape index: {}]   ;;  %s3446_s1 = inlined_call_operand.vmem [shape: bf16[32,128], index: 1, kind: input, shape index: {}]   ;;  %s3447_s2 = inlined_call_operand.vmem [shape: f32[1,128], index: 2, kind: input, shape index: {}]   ;;  %s3448_s3 = inlined_call_operand.vmem [shape: bf16[416,128], index: 3, kind: output, shape index: {}]  }
   0x1   :  { %s2785_s14 = smov 0  }
   0x2 LB: > { %s2045_s15 = sadd.s32 4294967295, %s2757_s14   ;;  %s2798_s16 = sadd.s32 1, %s2757_s14   ;;  %s2757_s14 = sphi %s2785_s14, %s3487_s14   ;;  %s2753_s13 = sphi %s2783_s13, %s3486_s13   ;;  %s2749_s12 = sphi %s2781_s12, %s3485_s12  }
   0x3   : > { %s17_s17 = ssub.s32 %s2757_s14, %s2798_s16  ;;  %s20_s18 = sadd.s32 1, %s2753_s13 }
   0x4   : > { %p18_p0 = scmp.eq.s32.totalorder %s17_s17, 0  ;;  %p27_p1 = scmp.ne.s32.totalorder %s2753_s13, %s2749_s12 }
   0x5   : > { %p28_p2 = scmp.eq.s32.totalorder %s2757_s14, 0  ;;  %p2048_p4 = scmp.ge.s32.totalorder %s2757_s14, 2 }
   0x6   : > { %s2807_s19 = scalar_select %p18_p0, %s2753_s13, %s20_s18  }
   0x7   : > { %p29_p3 = por %p28_p2, %p27_p1  ;;  %127 = sbr.rel (%p2048_p4) target bundleno = 45 (0x2d), region = 24 }
   0xe   : > { %130 = sbr.rel (!%p29_p3) target bundleno = 45 (0x2d), region = 28  ;;  %s132_s20 = sand.u32 (%p29_p3), 1, %s2753_s13  }
   0xf   : > { %s2265_s21 = smul.u32 (%p29_p3), 104, %s2757_s14 }
  0x10   : > { %s2653_s22 = smul.u32 (%p29_p3), 416, %s132_s20 }
  0x11   : > { %s2815_s25 = scalar_lea.vmem (%p29_p3), %s3445_s0, %s2265_s21 }
  0x12   : > { %v153_v0 = vld [vmem:[%s2815_s25] sm:$0xff] (%p29_p3)   ;;  %v157_v1 = vld [vmem:[%s2815_s25 + $0x8] sm:$0xff] (%p29_p3)   ;;  %v161_v2 = vld [vmem:[%s2815_s25 + $0x10] sm:$0xff] (%p29_p3)   ;;  %s2820_s26 = scalar_lea.vmem (%p29_p3), [#allocation2], %s2653_s22 }
  0x13   : > { %154 = vst [vmem:[%s2820_s26] sm:$0xff] (%p29_p3), %v153_v0   ;;  %158 = vst [vmem:[%s2820_s26 + $0x8] sm:$0xff] (%p29_p3), %v157_v1   ;;  %v165_v3 = vld [vmem:[%s2815_s25 + $0x18] sm:$0xff] (%p29_p3)   ;;  %v169_v4 = vld [vmem:[%s2815_s25 + $0x20] sm:$0xff] (%p29_p3)  }
  0x14   : > { %162 = vst [vmem:[%s2820_s26 + $0x10] sm:$0xff] (%p29_p3), %v161_v2   ;;  %v173_v5 = vld [vmem:[%s2815_s25 + $0x28] sm:$0xff] (%p29_p3)   ;;  %166 = vst [vmem:[%s2820_s26 + $0x18] sm:$0xff] (%p29_p3), %v165_v3   ;;  %v177_v6 = vld [vmem:[%s2815_s25 + $0x30] sm:$0xff] (%p29_p3)  }
  0x15   : > { %170 = vst [vmem:[%s2820_s26 + $0x20] sm:$0xff] %v169_v4   ;;  %174 = vst [vmem:[%s2820_s26 + $0x28] sm:$0xff] %v173_v5   ;;  %v181_v7 = vld [vmem:[%s2815_s25 + $0x38] sm:$0xff]   ;;  %v185_v8 = vld [vmem:[%s2815_s25 + $0x40] sm:$0xff]  }
  0x16   : > { %178 = vst [vmem:[%s2820_s26 + $0x30] sm:$0xff] %v177_v6   ;;  %182 = vst [vmem:[%s2820_s26 + $0x38] sm:$0xff] %v181_v7   ;;  %v189_v9 = vld [vmem:[%s2815_s25 + $0x48] sm:$0xff]   ;;  %v193_v10 = vld [vmem:[%s2815_s25 + $0x50] sm:$0xff]  }
  0x17   : > { %186 = vst [vmem:[%s2820_s26 + $0x40] sm:$0xff] %v185_v8   ;;  %v197_v11 = vld [vmem:[%s2815_s25 + $0x58] sm:$0xff]   ;;  %190 = vst [vmem:[%s2820_s26 + $0x48] sm:$0xff] %v189_v9   ;;  %v201_v12 = vld [vmem:[%s2815_s25 + $0x60] sm:$0xff]  }
  0x18   : > { %194 = vst [vmem:[%s2820_s26 + $0x50] sm:$0xff] %v193_v10   ;;  %198 = vst [vmem:[%s2820_s26 + $0x58] sm:$0xff] %v197_v11   ;;  %v205_v13 = vld [vmem:[%s2815_s25 + $0xd0] sm:$0xff]   ;;  %v209_v14 = vld [vmem:[%s2815_s25 + $0xd8] sm:$0xff]  }
  0x19   : > { %202 = vst [vmem:[%s2820_s26 + $0x60] sm:$0xff] %v201_v12   ;;  %206 = vst [vmem:[%s2820_s26 + $0x68] sm:$0xff] %v205_v13   ;;  %v213_v15 = vld [vmem:[%s2815_s25 + $0xe0] sm:$0xff]   ;;  %v217_v16 = vld [vmem:[%s2815_s25 + $0xe8] sm:$0xff]  }
  0x1a   : > { %210 = vst [vmem:[%s2820_s26 + $0x70] sm:$0xff] %v209_v14   ;;  %v221_v17 = vld [vmem:[%s2815_s25 + $0xf0] sm:$0xff]   ;;  %214 = vst [vmem:[%s2820_s26 + $0x78] sm:$0xff] %v213_v15   ;;  %v225_v18 = vld [vmem:[%s2815_s25 + $0xf8] sm:$0xff]  }
  0x1b   : > { %218 = vst [vmem:[%s2820_s26 + $0x80] sm:$0xff] %v217_v16   ;;  %222 = vst [vmem:[%s2820_s26 + $0x88] sm:$0xff] %v221_v17   ;;  %v229_v19 = vld [vmem:[%s2815_s25 + $0x100] sm:$0xff]   ;;  %v233_v20 = vld [vmem:[%s2815_s25 + $0x108] sm:$0xff]  }
  0x1c   : > { %226 = vst [vmem:[%s2820_s26 + $0x90] sm:$0xff] %v225_v18   ;;  %230 = vst [vmem:[%s2820_s26 + $0x98] sm:$0xff] %v229_v19   ;;  %v237_v21 = vld [vmem:[%s2815_s25 + $0x110] sm:$0xff]   ;;  %v241_v22 = vld [vmem:[%s2815_s25 + $0x118] sm:$0xff]  }
  0x1d   : > { %234 = vst [vmem:[%s2820_s26 + $0xa0] sm:$0xff] %v233_v20   ;;  %v245_v23 = vld [vmem:[%s2815_s25 + $0x120] sm:$0xff]   ;;  %238 = vst [vmem:[%s2820_s26 + $0xa8] sm:$0xff] %v237_v21   ;;  %v249_v24 = vld [vmem:[%s2815_s25 + $0x128] sm:$0xff]  }
  0x1e   : > { %242 = vst [vmem:[%s2820_s26 + $0xb0] sm:$0xff] %v241_v22   ;;  %246 = vst [vmem:[%s2820_s26 + $0xb8] sm:$0xff] %v245_v23   ;;  %v253_v25 = vld [vmem:[%s2815_s25 + $0x130] sm:$0xff]   ;;  %v257_v26 = vld [vmem:[%s2815_s25 + $0x1a0] sm:$0xff]  }
  0x1f   : > { %250 = vst [vmem:[%s2820_s26 + $0xc0] sm:$0xff] %v249_v24   ;;  %254 = vst [vmem:[%s2820_s26 + $0xc8] sm:$0xff] %v253_v25   ;;  %v261_v27 = vld [vmem:[%s2815_s25 + $0x1a8] sm:$0xff]   ;;  %v265_v28 = vld [vmem:[%s2815_s25 + $0x1b0] sm:$0xff]  }
  0x20   : > { %258 = vst [vmem:[%s2820_s26 + $0xd0] sm:$0xff] %v257_v26   ;;  %v269_v29 = vld [vmem:[%s2815_s25 + $0x1b8] sm:$0xff]   ;;  %262 = vst [vmem:[%s2820_s26 + $0xd8] sm:$0xff] %v261_v27   ;;  %v273_v30 = vld [vmem:[%s2815_s25 + $0x1c0] sm:$0xff]  }
  0x21   : > { %266 = vst [vmem:[%s2820_s26 + $0xe0] sm:$0xff] %v265_v28   ;;  %270 = vst [vmem:[%s2820_s26 + $0xe8] sm:$0xff] %v269_v29   ;;  %v277_v31 = vld [vmem:[%s2815_s25 + $0x1c8] sm:$0xff]   ;;  %v281_v32 = vld [vmem:[%s2815_s25 + $0x1d0] sm:$0xff]  }
  0x22   : > { %274 = vst [vmem:[%s2820_s26 + $0xf0] sm:$0xff] %v273_v30   ;;  %278 = vst [vmem:[%s2820_s26 + $0xf8] sm:$0xff] %v277_v31   ;;  %v285_v33 = vld [vmem:[%s2815_s25 + $0x1d8] sm:$0xff]   ;;  %v289_v34 = vld [vmem:[%s2815_s25 + $0x1e0] sm:$0xff]  }
  0x23   : > { %282 = vst [vmem:[%s2820_s26 + $0x100] sm:$0xff] %v281_v32   ;;  %v293_v35 = vld [vmem:[%s2815_s25 + $0x1e8] sm:$0xff]   ;;  %286 = vst [vmem:[%s2820_s26 + $0x108] sm:$0xff] %v285_v33   ;;  %v297_v36 = vld [vmem:[%s2815_s25 + $0x1f0] sm:$0xff]  }
  0x24   : > { %290 = vst [vmem:[%s2820_s26 + $0x110] sm:$0xff] %v289_v34   ;;  %294 = vst [vmem:[%s2820_s26 + $0x118] sm:$0xff] %v293_v35   ;;  %v301_v37 = vld [vmem:[%s2815_s25 + $0x1f8] sm:$0xff]   ;;  %v305_v38 = vld [vmem:[%s2815_s25 + $0x200] sm:$0xff]  }
  0x25   : > { %298 = vst [vmem:[%s2820_s26 + $0x120] sm:$0xff] %v297_v36   ;;  %302 = vst [vmem:[%s2820_s26 + $0x128] sm:$0xff] %v301_v37   ;;  %v309_v39 = vld [vmem:[%s2815_s25 + $0x270] sm:$0xff]   ;;  %v313_v40 = vld [vmem:[%s2815_s25 + $0x278] sm:$0xff]  }
  0x26   : > { %306 = vst [vmem:[%s2820_s26 + $0x130] sm:$0xff] %v305_v38   ;;  %v317_v41 = vld [vmem:[%s2815_s25 + $0x280] sm:$0xff]   ;;  %310 = vst [vmem:[%s2820_s26 + $0x138] sm:$0xff] %v309_v39   ;;  %v321_v42 = vld [vmem:[%s2815_s25 + $0x288] sm:$0xff]  }
  0x27   : > { %314 = vst [vmem:[%s2820_s26 + $0x140] sm:$0xff] %v313_v40   ;;  %318 = vst [vmem:[%s2820_s26 + $0x148] sm:$0xff] %v317_v41   ;;  %v325_v43 = vld [vmem:[%s2815_s25 + $0x290] sm:$0xff]   ;;  %v329_v44 = vld [vmem:[%s2815_s25 + $0x298] sm:$0xff]  }
  0x28   : > { %322 = vst [vmem:[%s2820_s26 + $0x150] sm:$0xff] %v321_v42   ;;  %326 = vst [vmem:[%s2820_s26 + $0x158] sm:$0xff] %v325_v43   ;;  %v333_v45 = vld [vmem:[%s2815_s25 + $0x2a0] sm:$0xff]   ;;  %v337_v46 = vld [vmem:[%s2815_s25 + $0x2a8] sm:$0xff]  }
  0x29   : > { %330 = vst [vmem:[%s2820_s26 + $0x160] sm:$0xff] %v329_v44   ;;  %v341_v47 = vld [vmem:[%s2815_s25 + $0x2b0] sm:$0xff]   ;;  %334 = vst [vmem:[%s2820_s26 + $0x168] sm:$0xff] %v333_v45   ;;  %v345_v48 = vld [vmem:[%s2815_s25 + $0x2b8] sm:$0xff]  }
  0x2a   : > { %338 = vst [vmem:[%s2820_s26 + $0x170] sm:$0xff] %v337_v46   ;;  %342 = vst [vmem:[%s2820_s26 + $0x178] sm:$0xff] %v341_v47   ;;  %v349_v49 = vld [vmem:[%s2815_s25 + $0x2c0] sm:$0xff]   ;;  %v353_v50 = vld [vmem:[%s2815_s25 + $0x2c8] sm:$0xff]  }
  0x2b   : > { %346 = vst [vmem:[%s2820_s26 + $0x180] sm:$0xff] %v345_v48   ;;  %350 = vst [vmem:[%s2820_s26 + $0x188] sm:$0xff] %v349_v49   ;;  %v357_v51 = vld [vmem:[%s2815_s25 + $0x2d0] sm:$0xff]  }
  0x2c   : > { %354 = vst [vmem:[%s2820_s26 + $0x190] sm:$0xff] %v353_v50   ;;  %358 = vst [vmem:[%s2820_s26 + $0x198] sm:$0xff] %v357_v51  }
  0x2d PF: > { %p2050_p5 = scmp.ge.s32.totalorder %s2757_s14, 1  ;;  %p590_p6 = scmp.lt.s32.totalorder %s2757_s14, 3 }
  0x2f   : > { %p591_p7 = pnand %p2050_p5, %p590_p6 }
  0x31   : > { %594 = sbr.rel (%p591_p7) target bundleno = 490 (0x1ea), region = 69 }
  0x38   : > { %v2681_v52 = vld [vmem:[%s3446_s1] sm:$0xff]   ;;  %v2759_v53 = vmov 0.0   ;;  %v2682_v54 = vld [vmem:[%s3446_s1 + $0x8] sm:$0xff]   ;;  %s597_s4 = sand.u32 1, %s2749_s12   ;;  %vm2760_vm0 = vmmov 0   ;;  %vm735_vm1 = vcmask 261120  }
  0x39   : > { %2429 = vmatprep.subr.bf16.mxu0 %v2759_v53  ;;  %2485 = vmatprep.subr.bf16.mxu1 %v2759_v53  ;;  %s2654_s5 = smul.u32 416, %s597_s4 }
  0x3a   : > { %2430 = vmatpush3.bf16.msra.mxu0 %v2681_v52  ;;  %2486 = vmatpush3.bf16.msra.mxu1 %v2681_v52  ;;  %s621_s7 = smul.u32 26, %s2045_s15 }
  0x3b   : > { %2431 = vmatprep.subr.bf16.mxu0 %v2759_v53  ;;  %2487 = vmatprep.subr.bf16.mxu1 %v2759_v53  ;;  %s2940_s6 = scalar_lea.vmem [#allocation2], %s2654_s5 }
  0x3c   : > { %2433 = vmatprep.mubr.msk.bf16.mxu0 %vm2760_vm0, %v2759_v53  ;;  %2489 = vmatprep.mubr.msk.bf16.mxu1 %vm2760_vm0, %v2759_v53  ;;  %v2683_v55 = vld [vmem:[%s2940_s6] sm:$0xff]   ;;  %v2684_v56 = vld [vmem:[%s2940_s6 + $0x68] sm:$0xff]   ;;  %v2686_v58 = vld [vmem:[%s2940_s6 + $0x70] sm:$0xff]   ;;  %p622_p8 = scmp.lt.s32.totalorder %s621_s7, 51 }
  0x3d   : > { %v2685_v57 = vld [vmem:[%s2940_s6 + $0x8] sm:$0xff]   ;;  %v2687_v59 = vld [vmem:[%s2940_s6 + $0x10] sm:$0xff]   ;;  %v2688_v60 = vld [vmem:[%s2940_s6 + $0x78] sm:$0xff]  }
  0x3e   : > { %2432 = vmatpush3.bf16.msra.mxu0 %v2682_v54  ;;  %2488 = vmatpush3.bf16.msra.mxu1 %v2682_v54  ;;  %v2689_v61 = vld [vmem:[%s2940_s6 + $0x18] sm:$0xff]   ;;  %v2690_v62 = vld [vmem:[%s2940_s6 + $0x80] sm:$0xff]   ;;  %v2692_v0 = vld [vmem:[%s2940_s6 + $0x88] sm:$0xff]   ;;  %s3489_s7 = smov (!%p622_p8, %s621_s7), 51 }
  0x3f   : > { %2541 = vmatprep.subr.bf16.mxu0 %v2759_v53  ;;  %2597 = vmatprep.subr.bf16.mxu1 %v2759_v53  ;;  %v2691_v63 = vld [vmem:[%s2940_s6 + $0x20] sm:$0xff]   ;;  %v2693_v1 = vld [vmem:[%s2940_s6 + $0x28] sm:$0xff]   ;;  %v2694_v2 = vld [vmem:[%s2940_s6 + $0x90] sm:$0xff]   ;;  %s2051_s10 = sshll.u32 %s3489_s7, 2 }
  0x40   : > { %v2695_v3 = vld [vmem:[%s2940_s6 + $0x30] sm:$0xff]   ;;  %v2696_v4 = vld [vmem:[%s2940_s6 + $0x98] sm:$0xff]   ;;  %v2698_v6 = vld [vmem:[%s2940_s6 + $0xa0] sm:$0xff]   ;;  %s3327_s14 = scalar_lea.vmem %s3448_s3, %s2051_s10 }
  0x41   : > { %2434 = vmatmul.mubr.msk.bf16.vlgmr.msra.gmra.mrb[0].mxu0 %vm735_vm1, %v2683_v55  ;;  %2490 = vmatmul.mubr.msk.bf16.vlgmr.msra.gmra.mrb[0].mxu1 %vm735_vm1, %v2684_v56  ;;  %v2697_v5 = vld [vmem:[%s2940_s6 + $0x38] sm:$0xff]   ;;  %v2699_v7 = vld [vmem:[%s2940_s6 + $0x40] sm:$0xff]   ;;  %v2700_v8 = vld [vmem:[%s2940_s6 + $0xa8] sm:$0xff]  }
  0x42   : > { %2542 = vmatpush3.bf16.msra.mxu0 %v2681_v52  ;;  %2598 = vmatpush3.bf16.msra.mxu1 %v2681_v52  ;;  %v2701_v9 = vld [vmem:[%s2940_s6 + $0x48] sm:$0xff]   ;;  %v2702_v10 = vld [vmem:[%s2940_s6 + $0xb0] sm:$0xff]   ;;  %v2704_v12 = vld [vmem:[%s2940_s6 + $0xb8] sm:$0xff]  }
  0x43   : > { %2437 = vmatprep.mubr.msk.bf16.mxu0 %vm2760_vm0, %v2759_v53  ;;  %2493 = vmatprep.mubr.msk.bf16.mxu1 %vm2760_vm0, %v2759_v53  ;;  %v2703_v11 = vld [vmem:[%s2940_s6 + $0x50] sm:$0xff]   ;;  %v2705_v13 = vld [vmem:[%s2940_s6 + $0x58] sm:$0xff]   ;;  %v2706_v14 = vld [vmem:[%s2940_s6 + $0xc0] sm:$0xff]  }
  0x44   : > { %2543 = vmatprep.subr.bf16.mxu0 %v2759_v53  ;;  %2599 = vmatprep.subr.bf16.mxu1 %v2759_v53  ;;  %v2707_v15 = vld [vmem:[%s2940_s6 + $0x60] sm:$0xff]   ;;  %v2708_v16 = vld [vmem:[%s2940_s6 + $0xc8] sm:$0xff]   ;;  %v2709_v17 = vld [vmem:[%s2940_s6 + $0xd0] sm:$0xff]  }
  0x45   : > { %v2710_v18 = vld [vmem:[%s2940_s6 + $0x138] sm:$0xff]   ;;  %v2712_v20 = vld [vmem:[%s2940_s6 + $0x140] sm:$0xff]   ;;  %v2714_v22 = vld [vmem:[%s2940_s6 + $0x148] sm:$0xff]  }
  0x46   : > { %2544 = vmatpush3.bf16.msra.mxu0 %v2682_v54  ;;  %2600 = vmatpush3.bf16.msra.mxu1 %v2682_v54  ;;  %v2711_v19 = vld [vmem:[%s2940_s6 + $0xd8] sm:$0xff]   ;;  %v2713_v21 = vld [vmem:[%s2940_s6 + $0xe0] sm:$0xff]   ;;  %v2715_v23 = vld [vmem:[%s2940_s6 + $0xe8] sm:$0xff]  }
  0x47   : > { %v2716_v24 = vld [vmem:[%s2940_s6 + $0x150] sm:$0xff]   ;;  %v2718_v26 = vld [vmem:[%s2940_s6 + $0x158] sm:$0xff]   ;;  %v2720_v28 = vld [vmem:[%s2940_s6 + $0x160] sm:$0xff]  }
  0x48   : > { %v2717_v25 = vld [vmem:[%s2940_s6 + $0xf0] sm:$0xff]   ;;  %v2719_v27 = vld [vmem:[%s2940_s6 + $0xf8] sm:$0xff]   ;;  %v2721_v29 = vld [vmem:[%s2940_s6 + $0x100] sm:$0xff]  }
  0x49   : > { %2438 = vmatmul.mubr.msk.bf16.gmra.mrb[4].mxu0 %vm735_vm1, %v2685_v57  ;;  %2494 = vmatmul.mubr.msk.bf16.gmra.mrb[4].mxu1 %vm735_vm1, %v2686_v58  ;;  %v2722_v30 = vld [vmem:[%s2940_s6 + $0x168] sm:$0xff]   ;;  %v2724_v32 = vld [vmem:[%s2940_s6 + $0x170] sm:$0xff]   ;;  %v2726_v34 = vld [vmem:[%s2940_s6 + $0x178] sm:$0xff]  }
  0x4a   : > { %2441 = vmatprep.mubr.msk.bf16.mxu0 %vm2760_vm0, %v2759_v53  ;;  %2497 = vmatprep.mubr.msk.bf16.mxu1 %vm2760_vm0, %v2759_v53  ;;  %v2723_v31 = vld [vmem:[%s2940_s6 + $0x108] sm:$0xff]   ;;  %v2725_v33 = vld [vmem:[%s2940_s6 + $0x110] sm:$0xff]   ;;  %v2727_v35 = vld [vmem:[%s2940_s6 + $0x118] sm:$0xff]  }
  0x4b   : > { %v2728_v36 = vld [vmem:[%s2940_s6 + $0x180] sm:$0xff]   ;;  %v2730_v38 = vld [vmem:[%s2940_s6 + $0x188] sm:$0xff]   ;;  %v2732_v40 = vld [vmem:[%s2940_s6 + $0x190] sm:$0xff]  }
  0x4c   : > { %v2729_v37 = vld [vmem:[%s2940_s6 + $0x120] sm:$0xff]   ;;  %v2731_v39 = vld [vmem:[%s2940_s6 + $0x128] sm:$0xff]   ;;  %v2733_v41 = vld [vmem:[%s2940_s6 + $0x130] sm:$0xff]  }
  0x4d   : > { %v2734_v42 = vld [vmem:[%s2940_s6 + $0x198] sm:$0xff]  }
  0x51   : > { %2442 = vmatmul.mubr.msk.bf16.gmra.mrb[8].mxu0 %vm735_vm1, %v2687_v59  ;;  %2498 = vmatmul.mubr.msk.bf16.gmra.mrb[8].mxu1 %vm735_vm1, %v2688_v60  ;;  %v3314_v60 = vld [vmem:[%s3447_s2] ss:$0 sm:$0xff] }
  0x52   : > { %2445 = vmatprep.mubr.msk.bf16.mxu0 %vm2760_vm0, %v2759_v53  ;;  %2501 = vmatprep.mubr.msk.bf16.mxu1 %vm2760_vm0, %v2759_v53 }
  0x59   : > { %2446 = vmatmul.mubr.msk.bf16.gmra.mrb[12].mxu0 %vm735_vm1, %v2689_v61  ;;  %2502 = vmatmul.mubr.msk.bf16.gmra.mrb[12].mxu1 %vm735_vm1, %v2690_v62 }
  0x5a   : > { %2449 = vmatprep.mubr.msk.bf16.mxu0 %vm2760_vm0, %v2759_v53  ;;  %2505 = vmatprep.mubr.msk.bf16.mxu1 %vm2760_vm0, %v2759_v53 }
  0x61   : > { %2450 = vmatmul.mubr.msk.bf16.gmra.mrb[16].mxu0 %vm735_vm1, %v2691_v63  ;;  %2506 = vmatmul.mubr.msk.bf16.gmra.mrb[16].mxu1 %vm735_vm1, %v2692_v0 }
  0x62   : > { %2453 = vmatprep.mubr.msk.bf16.mxu0 %vm2760_vm0, %v2759_v53  ;;  %2509 = vmatprep.mubr.msk.bf16.mxu1 %vm2760_vm0, %v2759_v53 }
  0x69   : > { %2454 = vmatmul.mubr.msk.bf16.gmra.mrb[20].mxu0 %vm735_vm1, %v2693_v1  ;;  %2510 = vmatmul.mubr.msk.bf16.gmra.mrb[20].mxu1 %vm735_vm1, %v2694_v2 }
  0x6a   : > { %2457 = vmatprep.mubr.msk.bf16.mxu0 %vm2760_vm0, %v2759_v53  ;;  %2513 = vmatprep.mubr.msk.bf16.mxu1 %vm2760_vm0, %v2759_v53 }
  0x71   : > { %2458 = vmatmul.mubr.msk.bf16.gmra.mrb[24].mxu0 %vm735_vm1, %v2695_v3  ;;  %2514 = vmatmul.mubr.msk.bf16.gmra.mrb[24].mxu1 %vm735_vm1, %v2696_v4 }
  0x72   : > { %2461 = vmatprep.mubr.msk.bf16.mxu0 %vm2760_vm0, %v2759_v53  ;;  %2517 = vmatprep.mubr.msk.bf16.mxu1 %vm2760_vm0, %v2759_v53 }
  0x79   : > { %2462 = vmatmul.mubr.msk.bf16.gmra.mrb[28].mxu0 %vm735_vm1, %v2697_v5  ;;  %2518 = vmatmul.mubr.msk.bf16.gmra.mrb[28].mxu1 %vm735_vm1, %v2698_v6 }
  0x7a   : > { %2465 = vmatprep.mubr.msk.bf16.mxu0 %vm2760_vm0, %v2759_v53  ;;  %2521 = vmatprep.mubr.msk.bf16.mxu1 %vm2760_vm0, %v2759_v53 }
  0x81   : > { %2466 = vmatmul.mubr.msk.bf16.gmra.mrb[32].mxu0 %vm735_vm1, %v2699_v7  ;;  %2522 = vmatmul.mubr.msk.bf16.gmra.mrb[32].mxu1 %vm735_vm1, %v2700_v8 }
  0x82   : > { %2469 = vmatprep.mubr.msk.bf16.mxu0 %vm2760_vm0, %v2759_v53  ;;  %2525 = vmatprep.mubr.msk.bf16.mxu1 %vm2760_vm0, %v2759_v53 }
  0x89   : > { %2470 = vmatmul.mubr.msk.bf16.gmra.mrb[36].mxu0 %vm735_vm1, %v2701_v9  ;;  %2526 = vmatmul.mubr.msk.bf16.gmra.mrb[36].mxu1 %vm735_vm1, %v2702_v10 }
  0x8a   : > { %2473 = vmatprep.mubr.msk.bf16.mxu0 %vm2760_vm0, %v2759_v53  ;;  %2529 = vmatprep.mubr.msk.bf16.mxu1 %vm2760_vm0, %v2759_v53 }
  0x91   : > { %2474 = vmatmul.mubr.msk.bf16.gmra.mrb[40].mxu0 %vm735_vm1, %v2703_v11  ;;  %2530 = vmatmul.mubr.msk.bf16.gmra.mrb[40].mxu1 %vm735_vm1, %v2704_v12 }
  0x92   : > { %2477 = vmatprep.mubr.msk.bf16.mxu0 %vm2760_vm0, %v2759_v53  ;;  %2533 = vmatprep.mubr.msk.bf16.mxu1 %vm2760_vm0, %v2759_v53 }
  0x99   : > { %2478 = vmatmul.mubr.msk.bf16.gmra.mrb[44].mxu0 %vm735_vm1, %v2705_v13  ;;  %2534 = vmatmul.mubr.msk.bf16.gmra.mrb[44].mxu1 %vm735_vm1, %v2706_v14 }
  0x9a   : > { %2481 = vmatprep.mubr.msk.bf16.mxu0 %vm2760_vm0, %v2759_v53  ;;  %2537 = vmatprep.mubr.msk.bf16.mxu1 %vm2760_vm0, %v2759_v53 }
  0xa1   : > { %2482 = vmatmul.mubr.msk.bf16.gmra.mrb[48].mxu0 %vm735_vm1, %v2707_v15  ;;  %2538 = vmatmul.mubr.msk.bf16.gmra.mrb[48].mxu1 %vm735_vm1, %v2708_v16 }
  0xa2   : > { %2545 = vmatprep.mubr.msk.bf16.mxu0 %vm2760_vm0, %v2759_v53  ;;  %2601 = vmatprep.mubr.msk.bf16.mxu1 %vm2760_vm0, %v2759_v53 }
  0xa9   : > { %2546 = vmatmul.mubr.msk.bf16.vlgmr.msra.gmra.mrb[52].mxu0 %vm735_vm1, %v2709_v17  ;;  %2602 = vmatmul.mubr.msk.bf16.vlgmr.msra.gmra.mrb[52].mxu1 %vm735_vm1, %v2710_v18 }
  0xaa   : > { %2549 = vmatprep.mubr.msk.bf16.mxu0 %vm2760_vm0, %v2759_v53  ;;  %2605 = vmatprep.mubr.msk.bf16.mxu1 %vm2760_vm0, %v2759_v53 }
  0xb1   : > { %2550 = vmatmul.mubr.msk.bf16.gmra.mrb[56].mxu0 %vm735_vm1, %v2711_v19  ;;  %2606 = vmatmul.mubr.msk.bf16.gmra.mrb[56].mxu1 %vm735_vm1, %v2712_v20 }
  0xb2   : > { %2553 = vmatprep.mubr.msk.bf16.mxu0 %vm2760_vm0, %v2759_v53  ;;  %2609 = vmatprep.mubr.msk.bf16.mxu1 %vm2760_vm0, %v2759_v53 }
  0xb9   : > { %2554 = vmatmul.mubr.msk.bf16.gmra.mrb[60].mxu0 %vm735_vm1, %v2713_v21  ;;  %2610 = vmatmul.mubr.msk.bf16.gmra.mrb[60].mxu1 %vm735_vm1, %v2714_v22 }
  0xba   : > { %2557 = vmatprep.mubr.msk.bf16.mxu0 %vm2760_vm0, %v2759_v53  ;;  %2613 = vmatprep.mubr.msk.bf16.mxu1 %vm2760_vm0, %v2759_v53 }
  0xc1   : > { %2558 = vmatmul.mubr.msk.bf16.gmra.mrb[64].mxu0 %vm735_vm1, %v2715_v23  ;;  %2614 = vmatmul.mubr.msk.bf16.gmra.mrb[64].mxu1 %vm735_vm1, %v2716_v24 }
  0xc2   : > { %2561 = vmatprep.mubr.msk.bf16.mxu0 %vm2760_vm0, %v2759_v53  ;;  %2617 = vmatprep.mubr.msk.bf16.mxu1 %vm2760_vm0, %v2759_v53 }
  0xc9   : > { %2562 = vmatmul.mubr.msk.bf16.gmra.mrb[68].mxu0 %vm735_vm1, %v2717_v25  ;;  %2618 = vmatmul.mubr.msk.bf16.gmra.mrb[68].mxu1 %vm735_vm1, %v2718_v26 }
  0xca   : > { %2565 = vmatprep.mubr.msk.bf16.mxu0 %vm2760_vm0, %v2759_v53  ;;  %2621 = vmatprep.mubr.msk.bf16.mxu1 %vm2760_vm0, %v2759_v53 }
  0xd1   : > { %2566 = vmatmul.mubr.msk.bf16.gmra.mrb[72].mxu0 %vm735_vm1, %v2719_v27  ;;  %2622 = vmatmul.mubr.msk.bf16.gmra.mrb[72].mxu1 %vm735_vm1, %v2720_v28 }
  0xd2   : > { %2569 = vmatprep.mubr.msk.bf16.mxu0 %vm2760_vm0, %v2759_v53  ;;  %2625 = vmatprep.mubr.msk.bf16.mxu1 %vm2760_vm0, %v2759_v53 }
  0xd9   : > { %2570 = vmatmul.mubr.msk.bf16.gmra.mrb[76].mxu0 %vm735_vm1, %v2721_v29  ;;  %2626 = vmatmul.mubr.msk.bf16.gmra.mrb[76].mxu1 %vm735_vm1, %v2722_v30 }
  0xda   : > { %2573 = vmatprep.mubr.msk.bf16.mxu0 %vm2760_vm0, %v2759_v53  ;;  %2629 = vmatprep.mubr.msk.bf16.mxu1 %vm2760_vm0, %v2759_v53 }
  0xe1   : > { %2574 = vmatmul.mubr.msk.bf16.gmra.mrb[80].mxu0 %vm735_vm1, %v2723_v31  ;;  %2630 = vmatmul.mubr.msk.bf16.gmra.mrb[80].mxu1 %vm735_vm1, %v2724_v32 }
  0xe2   : > { %2577 = vmatprep.mubr.msk.bf16.mxu0 %vm2760_vm0, %v2759_v53  ;;  %2633 = vmatprep.mubr.msk.bf16.mxu1 %vm2760_vm0, %v2759_v53 }
  0xe9   : > { %2578 = vmatmul.mubr.msk.bf16.gmra.mrb[84].mxu0 %vm735_vm1, %v2725_v33  ;;  %2634 = vmatmul.mubr.msk.bf16.gmra.mrb[84].mxu1 %vm735_vm1, %v2726_v34 }
  0xea   : > { %2581 = vmatprep.mubr.msk.bf16.mxu0 %vm2760_vm0, %v2759_v53  ;;  %2637 = vmatprep.mubr.msk.bf16.mxu1 %vm2760_vm0, %v2759_v53 }
  0xf1   : > { %2582 = vmatmul.mubr.msk.bf16.gmra.mrb[88].mxu0 %vm735_vm1, %v2727_v35  ;;  %2638 = vmatmul.mubr.msk.bf16.gmra.mrb[88].mxu1 %vm735_vm1, %v2728_v36 }
  0xf2   : > { %2585 = vmatprep.mubr.msk.bf16.mxu0 %vm2760_vm0, %v2759_v53  ;;  %2641 = vmatprep.mubr.msk.bf16.mxu1 %vm2760_vm0, %v2759_v53 }
  0xf9   : > { %2586 = vmatmul.mubr.msk.bf16.gmra.mrb[92].mxu0 %vm735_vm1, %v2729_v37  ;;  %2642 = vmatmul.mubr.msk.bf16.gmra.mrb[92].mxu1 %vm735_vm1, %v2730_v38 }
  0xfa   : > { %2589 = vmatprep.mubr.msk.bf16.mxu0 %vm2760_vm0, %v2759_v53  ;;  %2645 = vmatprep.mubr.msk.bf16.mxu1 %vm2760_vm0, %v2759_v53 }
 0x101   : > { %2590 = vmatmul.mubr.msk.bf16.gmra.mrb[96].mxu0 %vm735_vm1, %v2731_v39  ;;  %2646 = vmatmul.mubr.msk.bf16.gmra.mrb[96].mxu1 %vm735_vm1, %v2732_v40 }
 0x102   : > { %2593 = vmatprep.mubr.msk.bf16.mxu0 %vm2760_vm0, %v2759_v53  ;;  %2649 = vmatprep.mubr.msk.bf16.mxu1 %vm2760_vm0, %v2759_v53 }
 0x109   : > { %2594 = vmatmul.mubr.msk.bf16.gmra.mrb[100].mxu0 %vm735_vm1, %v2733_v41  ;;  %2650 = vmatmul.mubr.msk.bf16.gmra.mrb[100].mxu1 %vm735_vm1, %v2734_v42 }
 0x114   : > { %v3150_v43 = vpop.f32.mrb[0].mxu0  ;;  %v3152_v44 = vpop.f32.mrb[0].mxu1 }
 0x115   : > { %v1180_v45 = vmax.f32 %v3150_v43, %v3152_v44  ;;  %v2435_v46 = vpop.f32.mrb[1].mxu0  ;;  %v2491_v47 = vpop.f32.mrb[1].mxu1 }
 0x116   : > { %v3156_v48 = vpop.f32.mrb[2].mxu0  ;;  %v3158_v49 = vpop.f32.mrb[2].mxu1 }
 0x117   : > { %v1181_v50 = vmax.f32 %v3156_v48, %v3158_v49  ;;  %v2436_v51 = vpop.f32.mrb[3].mxu0  ;;  %v2492_v52 = vpop.f32.mrb[3].mxu1 }
 0x11c   : > { %v3162_v53 = vpop.f32.mrb[4].mxu0  ;;  %v3164_v54 = vpop.f32.mrb[4].mxu1 }
 0x11d   : > { %v2439_v56 = vpop.f32.mrb[5].mxu0  ;;  %v2495_v57 = vpop.f32.mrb[5].mxu1 }
 0x11e   : > { %v3168_v58 = vpop.f32.mrb[6].mxu0  ;;  %v3170_v59 = vpop.f32.mrb[6].mxu1 }
 0x11f   : > { %v2440_v61 = vpop.f32.mrb[7].mxu0  ;;  %v2496_v62 = vpop.f32.mrb[7].mxu1 }
 0x124   : > { %v3174_v63 = vpop.f32.mrb[8].mxu0  ;;  %v3176_v0 = vpop.f32.mrb[8].mxu1 }
 0x125   : > { %v2443_v2 = vpop.f32.mrb[9].mxu0  ;;  %v2499_v3 = vpop.f32.mrb[9].mxu1 }
 0x126   : > { %v3180_v4 = vpop.f32.mrb[10].mxu0  ;;  %v3182_v5 = vpop.f32.mrb[10].mxu1 }
 0x127   : > { %v2444_v7 = vpop.f32.mrb[11].mxu0  ;;  %v2500_v8 = vpop.f32.mrb[11].mxu1 }
 0x12c   : > { %v3186_v9 = vpop.f32.mrb[12].mxu0  ;;  %v3188_v10 = vpop.f32.mrb[12].mxu1 }
 0x12d   : > { %v2447_v12 = vpop.f32.mrb[13].mxu0  ;;  %v2503_v13 = vpop.f32.mrb[13].mxu1 }
 0x12e   : > { %v3192_v14 = vpop.f32.mrb[14].mxu0  ;;  %v3194_v15 = vpop.f32.mrb[14].mxu1 }
 0x12f   : > { %v2448_v17 = vpop.f32.mrb[15].mxu0  ;;  %v2504_v18 = vpop.f32.mrb[15].mxu1 }
 0x134   : > { %v3198_v19 = vpop.f32.mrb[16].mxu0  ;;  %v3200_v20 = vpop.f32.mrb[16].mxu1 }
 0x135   : > { %v2451_v22 = vpop.f32.mrb[17].mxu0  ;;  %v2507_v23 = vpop.f32.mrb[17].mxu1 }
 0x136   : > { %v3204_v24 = vpop.f32.mrb[18].mxu0  ;;  %v3206_v25 = vpop.f32.mrb[18].mxu1 }
 0x137   : > { %v2452_v27 = vpop.f32.mrb[19].mxu0  ;;  %v2508_v28 = vpop.f32.mrb[19].mxu1 }
 0x13c   : > { %v3210_v29 = vpop.f32.mrb[20].mxu0  ;;  %v3212_v30 = vpop.f32.mrb[20].mxu1 }
 0x13d   : > { %v2455_v32 = vpop.f32.mrb[21].mxu0  ;;  %v2511_v33 = vpop.f32.mrb[21].mxu1 }
 0x13e   : > { %v3216_v34 = vpop.f32.mrb[22].mxu0  ;;  %v3218_v35 = vpop.f32.mrb[22].mxu1 }
 0x13f   : > { %v2456_v37 = vpop.f32.mrb[23].mxu0  ;;  %v2512_v38 = vpop.f32.mrb[23].mxu1 }
 0x144   : > { %v3222_v39 = vpop.f32.mrb[24].mxu0  ;;  %v3224_v40 = vpop.f32.mrb[24].mxu1 }
 0x145   : > { %v2459_v42 = vpop.f32.mrb[25].mxu0  ;;  %v2515_v46 = vpop.f32.mrb[25].mxu1 }
 0x146   : > { %v3228_v47 = vpop.f32.mrb[26].mxu0  ;;  %v3230_v51 = vpop.f32.mrb[26].mxu1 }
 0x147   : > { %v2460_v56 = vpop.f32.mrb[27].mxu0  ;;  %v2516_v57 = vpop.f32.mrb[27].mxu1 }
 0x14c   : > { %v3234_v61 = vpop.f32.mrb[28].mxu0  ;;  %v3236_v62 = vpop.f32.mrb[28].mxu1 }
 0x14d   : > { %v2463_v3 = vpop.f32.mrb[29].mxu0  ;;  %v2519_v7 = vpop.f32.mrb[29].mxu1 }
 0x14e   : > { %v3240_v8 = vpop.f32.mrb[30].mxu0  ;;  %v3242_v12 = vpop.f32.mrb[30].mxu1 }
 0x14f   : > { %v2464_v17 = vpop.f32.mrb[31].mxu0  ;;  %v2520_v18 = vpop.f32.mrb[31].mxu1 }
 0x154   : > { %v3246_v22 = vpop.f32.mrb[32].mxu0  ;;  %v3248_v23 = vpop.f32.mrb[32].mxu1 }
 0x155   : > { %v2467_v28 = vpop.f32.mrb[33].mxu0  ;;  %v2523_v32 = vpop.f32.mrb[33].mxu1 }
 0x156   : > { %v3252_v33 = vpop.f32.mrb[34].mxu0  ;;  %v3254_v37 = vpop.f32.mrb[34].mxu1 }
 0x157   : > { %v2468_v42 = vpop.f32.mrb[35].mxu0  ;;  %v2524_v46 = vpop.f32.mrb[35].mxu1 }
 0x15c   : > { %v3258_v56 = vpop.f32.mrb[36].mxu0  ;;  %v3260_v57 = vpop.f32.mrb[36].mxu1 }
 0x15d   : > { %v2471_v7 = vpop.f32.mrb[37].mxu0  ;;  %v2527_v17 = vpop.f32.mrb[37].mxu1 }
 0x15e   : > { %v3264_v18 = vpop.f32.mrb[38].mxu0  ;;  %v3266_v28 = vpop.f32.mrb[38].mxu1 }
 0x15f   : > { %v2472_v27 = vpop.f32.mrb[39].mxu0  ;;  %v2528_v38 = vpop.f32.mrb[39].mxu1 }
 0x164   : > { %v3270_v42 = vpop.f32.mrb[40].mxu0  ;;  %v3272_v46 = vpop.f32.mrb[40].mxu1 }
 0x165   : > { %v2475_v2 = vpop.f32.mrb[41].mxu0  ;;  %v2531_v3 = vpop.f32.mrb[41].mxu1 }
 0x166   : > { %v3276_v7 = vpop.f32.mrb[42].mxu0  ;;  %v3278_v17 = vpop.f32.mrb[42].mxu1 }
 0x167   : > { %v2476_v41 = vpop.f32.mrb[43].mxu0  ;;  %v2532_v32 = vpop.f32.mrb[43].mxu1 }
 0x16c   : > { %v3282_v27 = vpop.f32.mrb[44].mxu0  ;;  %v3284_v38 = vpop.f32.mrb[44].mxu1 }
 0x16d   : > { %v2479_v31 = vpop.f32.mrb[45].mxu0  ;;  %v2535_v13 = vpop.f32.mrb[45].mxu1 }
 0x16e   : > { %v3288_v2 = vpop.f32.mrb[46].mxu0  ;;  %v3290_v3 = vpop.f32.mrb[46].mxu1 }
 0x16f   : > { %v2480_v52 = vpop.f32.mrb[47].mxu0  ;;  %v2536_v41 = vpop.f32.mrb[47].mxu1 }
 0x174   : > { %v3294_v32 = vpop.f32.mrb[48].mxu0  ;;  %v3296_v21 = vpop.f32.mrb[48].mxu1 }
 0x175   : > { %3453 = vst [vmem:[#allocation3_spill] sm:$0xff] %v3294_v32  ;;  %3454 = vst [vmem:[#allocation4_spill] sm:$0xff] %v3296_v21  ;;  %v2483_v36 = vpop.f32.mrb[49].mxu0  ;;  %v2539_v31 = vpop.f32.mrb[49].mxu1 }
 0x176   : > { %v3300_v13 = vpop.f32.mrb[50].mxu0  ;;  %v3302_v11 = vpop.f32.mrb[50].mxu1 }
 0x177   : > { %3455 = vst [vmem:[#allocation5_spill] sm:$0xff] %v3300_v13  ;;  %3456 = vst [vmem:[#allocation6_spill] sm:$0xff] %v3302_v11  ;;  %v2484_v1 = vpop.f32.mrb[51].mxu0  ;;  %v2540_v26 = vpop.f32.mrb[51].mxu1 }
 0x17c   : > { %v1371_v52 = vpop.f32.mrb[52].mxu0  ;;  %v1665_v41 = vpop.f32.mrb[52].mxu1 }
 0x17d   : > { %v1474_v16 = vmax.f32 %v1180_v45, %v1371_v52  ;;  %v2547_v36 = vpop.f32.mrb[53].mxu0  ;;  %v2603_v31 = vpop.f32.mrb[53].mxu1 }
 0x17e   : > { %v1374_v55 = vpop.f32.mrb[54].mxu0  ;;  %v1668_v6 = vpop.f32.mrb[54].mxu1 }
 0x17f   : > { %v1768_v1 = vmax.f32 %v1474_v16, %v1665_v41  ;;  %v1475_v26 = vmax.f32 %v1181_v50, %v1374_v55  ;;  %v2548_v11 = vpop.f32.mrb[55].mxu0  ;;  %v2604_v13 = vpop.f32.mrb[55].mxu1  ;;  %v3457_v16 = vmax.f32 %v3162_v53, %v3164_v54 }
 0x180   : > { %v3458_v11 = vmax.f32 %v3168_v58, %v3170_v59 }
 0x181   : > { %v1801_v43 = vadd.f32 %v3314_v60, %v1768_v1  ;;  %v1769_v44 = vmax.f32 %v1475_v26, %v1668_v6 }
 0x183   : > { %v1802_v45 = vadd.f32 %v3314_v60, %v1769_v44  ;;  %v1827_v31 = vmax.f32 %v1801_v43, 0.0 }
 0x184   : > { %v1379_v52 = vpop.f32.mrb[56].mxu0  ;;  %v1673_v36 = vpop.f32.mrb[56].mxu1 }
 0x185   : > { %v1828_v21 = vmax.f32 %v1802_v45, 0.0  ;;  %v1476_v41 = vmax.f32 %v3457_v16, %v1379_v52  ;;  %v2551_v32 = vpop.f32.mrb[57].mxu0  ;;  %v2607_v48 = vpop.f32.mrb[57].mxu1 }
 0x186   : > { %v1382_v49 = vpop.f32.mrb[58].mxu0  ;;  %v1676_v50 = vpop.f32.mrb[58].mxu1 }
 0x187   : > { %v2295_v55 = vpack.c.bf16 %v1828_v21, %v1827_v31  ;;  %v1770_v6 = vmax.f32 %v1476_v41, %v1673_v36  ;;  %v1477_v13 = vmax.f32 %v3458_v11, %v1382_v49  ;;  %v2552_v1 = vpop.f32.mrb[59].mxu0  ;;  %v2608_v26 = vpop.f32.mrb[59].mxu1  ;;  %v3459_v21 = vmax.f32 %v3174_v63, %v3176_v0 }
 0x188   : > { %v3460_v49 = vmax.f32 %v3180_v4, %v3182_v5 }
 0x189   : > { %2296 = vst [vmem:[%s3327_s14] sm:$0xff] %v2295_v55   ;;  %v1803_v53 = vadd.f32 %v3314_v60, %v1770_v6  ;;  %v1771_v54 = vmax.f32 %v1477_v13, %v1676_v50 }
 0x18b   : > { %v1804_v32 = vadd.f32 %v3314_v60, %v1771_v54  ;;  %v1829_v45 = vmax.f32 %v1803_v53, 0.0  ;;  %v3461_v54 = vmax.f32 %v3186_v9, %v3188_v10 }
 0x18c   : > { %v1387_v43 = vpop.f32.mrb[60].mxu0  ;;  %v1681_v44 = vpop.f32.mrb[60].mxu1 }
 0x18d   : > { %v1830_v52 = vmax.f32 %v1804_v32, 0.0  ;;  %v1478_v36 = vmax.f32 %v3459_v21, %v1387_v43  ;;  %v2555_v31 = vpop.f32.mrb[61].mxu0  ;;  %v2611_v58 = vpop.f32.mrb[61].mxu1  ;;  %v3462_v21 = vmax.f32 %v3192_v14, %v3194_v15 }
 0x18e   : > { %v1390_v59 = vpop.f32.mrb[62].mxu0  ;;  %v1684_v16 = vpop.f32.mrb[62].mxu1 }
 0x18f   : > { %v2300_v41 = vpack.c.bf16 %v1830_v52, %v1829_v45  ;;  %v1772_v48 = vmax.f32 %v1478_v36, %v1681_v44  ;;  %v1479_v50 = vmax.f32 %v3460_v49, %v1390_v59  ;;  %v2556_v55 = vpop.f32.mrb[63].mxu0  ;;  %v2612_v6 = vpop.f32.mrb[63].mxu1 }
 0x191   : > { %2357 = vst [vmem:[%s3327_s14 + $0x8] sm:$0xff] %v2300_v41   ;;  %v1805_v11 = vadd.f32 %v3314_v60, %v1772_v48  ;;  %v1773_v13 = vmax.f32 %v1479_v50, %v1684_v16  ;;  %v3463_v50 = vmax.f32 %v3198_v19, %v3200_v20 }
 0x193   : > { %v1806_v63 = vadd.f32 %v3314_v60, %v1773_v13  ;;  %v1831_v26 = vmax.f32 %v1805_v11, 0.0 }
 0x194   : > { %v1395_v0 = vpop.f32.mrb[64].mxu0  ;;  %v1689_v1 = vpop.f32.mrb[64].mxu1 }
 0x195   : > { %v1832_v53 = vmax.f32 %v1806_v63, 0.0  ;;  %v1480_v32 = vmax.f32 %v3461_v54, %v1395_v0  ;;  %v2559_v43 = vpop.f32.mrb[65].mxu0  ;;  %v2615_v4 = vpop.f32.mrb[65].mxu1  ;;  %v3464_v0 = vmax.f32 %v3204_v24, %v3206_v25 }
 0x196   : > { %v1398_v5 = vpop.f32.mrb[66].mxu0  ;;  %v1692_v44 = vpop.f32.mrb[66].mxu1 }
 0x197   : > { %v2305_v45 = vpack.c.bf16 %v1832_v53, %v1831_v26  ;;  %v1774_v52 = vmax.f32 %v1480_v32, %v1689_v1  ;;  %v1481_v36 = vmax.f32 %v3462_v21, %v1398_v5  ;;  %v2560_v31 = vpop.f32.mrb[67].mxu0  ;;  %v2616_v58 = vpop.f32.mrb[67].mxu1 }
 0x198   : > { %v3466_v58 = vmax.f32 %v3216_v34, %v3218_v35 }
 0x199   : > { %2358 = vst [vmem:[%s3327_s14 + $0x10] sm:$0xff] %v2305_v45   ;;  %v1807_v59 = vadd.f32 %v3314_v60, %v1774_v52  ;;  %v1775_v16 = vmax.f32 %v1481_v36, %v1692_v44  ;;  %v3465_v44 = vmax.f32 %v3210_v29, %v3212_v30 }
 0x19b   : > { %v1808_v9 = vadd.f32 %v3314_v60, %v1775_v16  ;;  %v1833_v48 = vmax.f32 %v1807_v59, 0.0 }
 0x19c   : > { %v1403_v10 = vpop.f32.mrb[68].mxu0  ;;  %v1697_v41 = vpop.f32.mrb[68].mxu1 }
 0x19d   : > { %v1834_v49 = vmax.f32 %v1808_v9, 0.0  ;;  %v1482_v55 = vmax.f32 %v3463_v50, %v1403_v10  ;;  %v2563_v6 = vpop.f32.mrb[69].mxu0  ;;  %v2619_v14 = vpop.f32.mrb[69].mxu1 }
 0x19e   : > { %v1406_v15 = vpop.f32.mrb[70].mxu0  ;;  %v1700_v11 = vpop.f32.mrb[70].mxu1 }
 0x19f   : > { %v2310_v13 = vpack.c.bf16 %v1834_v49, %v1833_v48  ;;  %v1776_v63 = vmax.f32 %v1482_v55, %v1697_v41  ;;  %v1483_v1 = vmax.f32 %v3464_v0, %v1406_v15  ;;  %v2564_v26 = vpop.f32.mrb[71].mxu0  ;;  %v2620_v53 = vpop.f32.mrb[71].mxu1  ;;  %v3467_v55 = vmax.f32 %v3222_v39, %v3224_v40 }
 0x1a1   : > { %2359 = vst [vmem:[%s3327_s14 + $0x18] sm:$0xff] %v2310_v13   ;;  %v1809_v54 = vadd.f32 %v3314_v60, %v1776_v63  ;;  %v1777_v32 = vmax.f32 %v1483_v1, %v1700_v11  ;;  %v3468_v63 = vmax.f32 %v3228_v47, %v3230_v51 }
 0x1a3   : > { %v1810_v19 = vadd.f32 %v3314_v60, %v1777_v32  ;;  %v1835_v4 = vmax.f32 %v1809_v54, 0.0 }
 0x1a4   : > { %v1411_v20 = vpop.f32.mrb[72].mxu0  ;;  %v1705_v43 = vpop.f32.mrb[72].mxu1 }
 0x1a5   : > { %v1836_v5 = vmax.f32 %v1810_v19, 0.0  ;;  %v1484_v45 = vmax.f32 %v3465_v44, %v1411_v20  ;;  %v2567_v52 = vpop.f32.mrb[73].mxu0  ;;  %v2623_v24 = vpop.f32.mrb[73].mxu1 }
 0x1a6   : > { %v1414_v25 = vpop.f32.mrb[74].mxu0  ;;  %v1708_v21 = vpop.f32.mrb[74].mxu1  ;;  %v3470_v24 = vmax.f32 %v3240_v8, %v3242_v12 }
 0x1a7   : > { %v2315_v36 = vpack.c.bf16 %v1836_v5, %v1835_v4  ;;  %v1778_v31 = vmax.f32 %v1484_v45, %v1705_v43  ;;  %v1485_v59 = vmax.f32 %v3466_v58, %v1414_v25  ;;  %v2568_v16 = vpop.f32.mrb[75].mxu0  ;;  %v2624_v9 = vpop.f32.mrb[75].mxu1  ;;  %v3469_v43 = vmax.f32 %v3234_v61, %v3236_v62 }
 0x1a9   : > { %2360 = vst [vmem:[%s3327_s14 + $0x20] sm:$0xff] %v2315_v36   ;;  %v1811_v10 = vadd.f32 %v3314_v60, %v1778_v31  ;;  %v1779_v41 = vmax.f32 %v1485_v59, %v1708_v21 }
 0x1ab   : > { %v1812_v29 = vadd.f32 %v3314_v60, %v1779_v41  ;;  %v1837_v49 = vmax.f32 %v1811_v10, 0.0  ;;  %v3471_v10 = vmax.f32 %v3246_v22, %v3248_v23 }
 0x1ac   : > { %v1419_v30 = vpop.f32.mrb[76].mxu0  ;;  %v1713_v48 = vpop.f32.mrb[76].mxu1 }
 0x1ad   : > { %v1838_v50 = vmax.f32 %v1812_v29, 0.0  ;;  %v1486_v6 = vmax.f32 %v3467_v55, %v1419_v30  ;;  %v2571_v14 = vpop.f32.mrb[77].mxu0  ;;  %v2627_v34 = vpop.f32.mrb[77].mxu1 }
 0x1ae   : > { %v1422_v35 = vpop.f32.mrb[78].mxu0  ;;  %v1716_v15 = vpop.f32.mrb[78].mxu1 }
 0x1af   : > { %v2320_v11 = vpack.c.bf16 %v1838_v50, %v1837_v49  ;;  %v1780_v13 = vmax.f32 %v1486_v6, %v1713_v48  ;;  %v1487_v0 = vmax.f32 %v3468_v63, %v1422_v35  ;;  %v2572_v1 = vpop.f32.mrb[79].mxu0  ;;  %v2628_v26 = vpop.f32.mrb[79].mxu1  ;;  %v3472_v50 = vmax.f32 %v3252_v33, %v3254_v37 }
 0x1b0   : > { %v3473_v63 = vmax.f32 %v3258_v56, %v3260_v57 }
 0x1b1   : > { %2361 = vst [vmem:[%s3327_s14 + $0x28] sm:$0xff] %v2320_v11   ;;  %v1813_v53 = vadd.f32 %v3314_v60, %v1780_v13  ;;  %v1781_v54 = vmax.f32 %v1487_v0, %v1716_v15 }
 0x1b3   : > { %v1814_v39 = vadd.f32 %v3314_v60, %v1781_v54  ;;  %v1839_v19 = vmax.f32 %v1813_v53, 0.0 }
 0x1b4   : > { %v1427_v40 = vpop.f32.mrb[80].mxu0  ;;  %v1721_v32 = vpop.f32.mrb[80].mxu1 }
 0x1b5   : > { %v1840_v20 = vmax.f32 %v1814_v39, 0.0  ;;  %v1488_v4 = vmax.f32 %v3469_v43, %v1427_v40  ;;  %v2575_v5 = vpop.f32.mrb[81].mxu0  ;;  %v2631_v47 = vpop.f32.mrb[81].mxu1  ;;  %v3474_v39 = vmax.f32 %v3264_v18, %v3266_v28 }
 0x1b6   : > { %v1430_v51 = vpop.f32.mrb[82].mxu0  ;;  %v1724_v44 = vpop.f32.mrb[82].mxu1 }
 0x1b7   : > { %v2325_v45 = vpack.c.bf16 %v1840_v20, %v1839_v19  ;;  %v1782_v52 = vmax.f32 %v1488_v4, %v1721_v32  ;;  %v1489_v25 = vmax.f32 %v3470_v24, %v1430_v51  ;;  %v2576_v21 = vpop.f32.mrb[83].mxu0  ;;  %v2632_v36 = vpop.f32.mrb[83].mxu1  ;;  %v3475_v51 = vmax.f32 %v3270_v42, %v3272_v46 }
 0x1b8   : > { %v3476_v21 = vmax.f32 %v3276_v7, %v3278_v17 }
 0x1b9   : > { %2362 = vst [vmem:[%s3327_s14 + $0x30] sm:$0xff] %v2325_v45   ;;  %v1815_v31 = vadd.f32 %v3314_v60, %v1782_v52  ;;  %v1783_v58 = vmax.f32 %v1489_v25, %v1724_v44 }
 0x1bb   : > { %v1816_v61 = vadd.f32 %v3314_v60, %v1783_v58  ;;  %v1841_v16 = vmax.f32 %v1815_v31, 0.0 }
 0x1bc   : > { %v1435_v62 = vpop.f32.mrb[84].mxu0  ;;  %v1729_v59 = vpop.f32.mrb[84].mxu1 }
 0x1bd   : > { %v1842_v9 = vmax.f32 %v1816_v61, 0.0  ;;  %v1490_v41 = vmax.f32 %v3471_v10, %v1435_v62  ;;  %v2579_v29 = vpop.f32.mrb[85].mxu0  ;;  %v2635_v8 = vpop.f32.mrb[85].mxu1  ;;  %v3477_v10 = vmax.f32 %v3282_v27, %v3284_v38 }
 0x1be   : > { %v1438_v12 = vpop.f32.mrb[86].mxu0  ;;  %v1732_v30 = vpop.f32.mrb[86].mxu1 }
 0x1bf   : > { %v2330_v48 = vpack.c.bf16 %v1842_v9, %v1841_v16  ;;  %v1784_v49 = vmax.f32 %v1490_v41, %v1729_v59  ;;  %v1491_v55 = vmax.f32 %v3472_v50, %v1438_v12  ;;  %v2580_v6 = vpop.f32.mrb[87].mxu0  ;;  %v2636_v14 = vpop.f32.mrb[87].mxu1 }
 0x1c1   : > { %2363 = vst [vmem:[%s3327_s14 + $0x38] sm:$0xff] %v2330_v48   ;;  %v1817_v34 = vadd.f32 %v3314_v60, %v1784_v49  ;;  %v1785_v35 = vmax.f32 %v1491_v55, %v1732_v30  ;;  %v3478_v48 = vmax.f32 %v3288_v2, %v3290_v3 }
 0x1c3   : > { %v1818_v22 = vadd.f32 %v3314_v60, %v1785_v35  ;;  %v1843_v11 = vmax.f32 %v1817_v34, 0.0 }
 0x1c4   : > { %v1443_v23 = vpop.f32.mrb[88].mxu0  ;;  %v1737_v15 = vpop.f32.mrb[88].mxu1 }
 0x1c5   : > { %v1844_v13 = vmax.f32 %v1818_v22, 0.0  ;;  %v1492_v0 = vmax.f32 %v3473_v63, %v1443_v23  ;;  %v2583_v1 = vpop.f32.mrb[89].mxu0  ;;  %v2639_v33 = vpop.f32.mrb[89].mxu1  ;;  %v3479_v23 = vld [vmem:[#allocation3_spill] sm:$0xff] }
 0x1c6   : > { %v1446_v37 = vpop.f32.mrb[90].mxu0  ;;  %v1740_v26 = vpop.f32.mrb[90].mxu1 }
 0x1c7   : > { %v2335_v53 = vpack.c.bf16 %v1844_v13, %v1843_v11  ;;  %v1786_v54 = vmax.f32 %v1492_v0, %v1737_v15  ;;  %v1493_v40 = vmax.f32 %v3474_v39, %v1446_v37  ;;  %v2584_v32 = vpop.f32.mrb[91].mxu0  ;;  %v2640_v19 = vpop.f32.mrb[91].mxu1  ;;  %v3480_v15 = vld [vmem:[#allocation4_spill] sm:$0xff]  ;;  %v3482_v37 = vld [vmem:[#allocation5_spill] sm:$0xff] }
 0x1c8   : > { %v3481_v11 = vmax.f32 %v3479_v23, %v3480_v15 }
 0x1c9   : > { %2364 = vst [vmem:[%s3327_s14 + $0x40] sm:$0xff] %v2335_v53   ;;  %v1819_v20 = vadd.f32 %v3314_v60, %v1786_v54  ;;  %v1787_v43 = vmax.f32 %v1493_v40, %v1740_v26  ;;  %v3483_v26 = vld [vmem:[#allocation6_spill] sm:$0xff] }
 0x1ca   : > { %v3484_v53 = vmax.f32 %v3482_v37, %v3483_v26 }
 0x1cb   : > { %v1820_v56 = vadd.f32 %v3314_v60, %v1787_v43  ;;  %v1845_v5 = vmax.f32 %v1819_v20, 0.0 }
 0x1cc   : > { %v1451_v57 = vpop.f32.mrb[92].mxu0  ;;  %v1745_v4 = vpop.f32.mrb[92].mxu1 }
 0x1cd   : > { %v1846_v47 = vmax.f32 %v1820_v56, 0.0  ;;  %v1494_v44 = vmax.f32 %v3475_v51, %v1451_v57  ;;  %v2587_v45 = vpop.f32.mrb[93].mxu0  ;;  %v2643_v18 = vpop.f32.mrb[93].mxu1 }
 0x1ce   : > { %v1454_v28 = vpop.f32.mrb[94].mxu0  ;;  %v1748_v52 = vpop.f32.mrb[94].mxu1 }
 0x1cf   : > { %v2340_v24 = vpack.c.bf16 %v1846_v47, %v1845_v5  ;;  %v1788_v25 = vmax.f32 %v1494_v44, %v1745_v4  ;;  %v1495_v36 = vmax.f32 %v3476_v21, %v1454_v28  ;;  %v2588_v31 = vpop.f32.mrb[95].mxu0  ;;  %v2644_v58 = vpop.f32.mrb[95].mxu1 }
 0x1d1   : > { %2365 = vst [vmem:[%s3327_s14 + $0x48] sm:$0xff] %v2340_v24   ;;  %v1821_v61 = vadd.f32 %v3314_v60, %v1788_v25  ;;  %v1789_v62 = vmax.f32 %v1495_v36, %v1748_v52 }
 0x1d3   : > { %v1822_v42 = vadd.f32 %v3314_v60, %v1789_v62  ;;  %v1847_v16 = vmax.f32 %v1821_v61, 0.0 }
 0x1d4   : > { %v1459_v46 = vpop.f32.mrb[96].mxu0  ;;  %v1753_v59 = vpop.f32.mrb[96].mxu1 }
 0x1d5   : > { %v1848_v9 = vmax.f32 %v1822_v42, 0.0  ;;  %v1496_v41 = vmax.f32 %v3477_v10, %v1459_v46  ;;  %v2591_v29 = vpop.f32.mrb[97].mxu0  ;;  %v2647_v7 = vpop.f32.mrb[97].mxu1 }
 0x1d6   : > { %v1462_v17 = vpop.f32.mrb[98].mxu0  ;;  %v1756_v8 = vpop.f32.mrb[98].mxu1 }
 0x1d7   : > { %v2345_v12 = vpack.c.bf16 %v1848_v9, %v1847_v16  ;;  %v1790_v30 = vmax.f32 %v1496_v41, %v1753_v59  ;;  %v1497_v49 = vmax.f32 %v3478_v48, %v1462_v17  ;;  %v2592_v50 = vpop.f32.mrb[99].mxu0  ;;  %v2648_v55 = vpop.f32.mrb[99].mxu1 }
 0x1d9   : > { %2366 = vst [vmem:[%s3327_s14 + $0x50] sm:$0xff] %v2345_v12   ;;  %v1823_v6 = vadd.f32 %v3314_v60, %v1790_v30  ;;  %v1791_v14 = vmax.f32 %v1497_v49, %v1756_v8 }
 0x1db   : > { %v1824_v27 = vadd.f32 %v3314_v60, %v1791_v14  ;;  %v1849_v35 = vmax.f32 %v1823_v6, 0.0 }
 0x1dc   : > { %v1467_v38 = vpop.f32.mrb[100].mxu0  ;;  %v1761_v34 = vpop.f32.mrb[100].mxu1 }
 0x1dd   : > { %v1850_v22 = vmax.f32 %v1824_v27, 0.0  ;;  %v1498_v13 = vmax.f32 %v3481_v11, %v1467_v38  ;;  %v2595_v63 = vpop.f32.mrb[101].mxu0  ;;  %v2651_v2 = vpop.f32.mrb[101].mxu1 }
 0x1de   : > { %v1470_v3 = vpop.f32.mrb[102].mxu0  ;;  %v1764_v0 = vpop.f32.mrb[102].mxu1 }
 0x1df   : > { %v2350_v1 = vpack.c.bf16 %v1850_v22, %v1849_v35  ;;  %v1792_v33 = vmax.f32 %v1498_v13, %v1761_v34  ;;  %v1499_v54 = vmax.f32 %v3484_v53, %v1470_v3  ;;  %v2596_v39 = vpop.f32.mrb[103].mxu0  ;;  %v2652_v40 = vpop.f32.mrb[103].mxu1 }
 0x1e1   : > { %2367 = vst [vmem:[%s3327_s14 + $0x58] sm:$0xff] %v2350_v1   ;;  %v1825_v32 = vadd.f32 %v3314_v60, %v1792_v33  ;;  %v1793_v19 = vmax.f32 %v1499_v54, %v1764_v0 }
 0x1e3   : > { %v1826_v20 = vadd.f32 %v3314_v60, %v1793_v19  ;;  %v1851_v43 = vmax.f32 %v1825_v32, 0.0 }
 0x1e5   : > { %v1852_v56 = vmax.f32 %v1826_v20, 0.0 }
 0x1e7   : > { %v2355_v57 = vpack.c.bf16 %v1852_v56, %v1851_v43 }
 0x1e9   : > { %2368 = vst [vmem:[%s3327_s14 + $0x60] sm:$0xff] %v2355_v57  }
 0x1ea PF: > { %p10_p9 = scmp.ge.s32.totalorder %s2798_s16, 4   ;;  %s3485_s12 = smov %s2753_s13 }
 0x1eb   : > { %s3486_s13 = smov %s2807_s19  ;;  %s3487_s14 = smov %s2798_s16 }
 0x1ec   :  { %12 = sbr.rel (!%p10_p9) target bundleno = 2 (0x2), region = 111 }

// kernel: cnn_forward.4
= control target key start
LH: loop header
LB: loop body
LE: loop exit
PB: predicated region body
PF: predicated region fallthrough
CT: control target
= control target key end

     0   :  { %s2170_s12 = smov 0   ;;  %s2172_s13 = smov 0   ;;  %s2788_s0 = inlined_call_operand.vmem [shape: bf16[4,128,400], index: 0, kind: input, shape index: {}]   ;;  %s2789_s1 = inlined_call_operand.vmem [shape: bf16[400,128], index: 1, kind: input, shape index: {}]   ;;  %s2790_s2 = inlined_call_operand.vmem [shape: f32[1,128], index: 2, kind: input, shape index: {}]   ;;  %s2791_s3 = inlined_call_operand.vmem [shape: bf16[128,128], index: 3, kind: output, shape index: {}]  }
   0x1   :  { %s2174_s14 = smov 0  }
   0x2 LB: > { %s1610_s15 = sadd.s32 4294967295, %s2147_s14   ;;  %s2187_s16 = sadd.s32 1, %s2147_s14   ;;  %s2147_s14 = sphi %s2174_s14, %s2794_s14   ;;  %s2143_s13 = sphi %s2172_s13, %s2793_s13   ;;  %s2139_s12 = sphi %s2170_s12, %s2792_s12  }
   0x3   : > { %s17_s17 = ssub.s32 %s2147_s14, %s2187_s16  ;;  %s20_s18 = sadd.s32 1, %s2143_s13 }
   0x4   : > { %p18_p0 = scmp.eq.s32.totalorder %s17_s17, 0  ;;  %p27_p1 = scmp.ne.s32.totalorder %s2143_s13, %s2139_s12 }
   0x5   : > { %p28_p2 = scmp.eq.s32.totalorder %s2147_s14, 0  ;;  %p1613_p4 = scmp.ge.s32.totalorder %s2147_s14, 2 }
   0x6   : > { %s2196_s19 = scalar_select %p18_p0, %s2143_s13, %s20_s18  }
   0x7   : > { %p29_p3 = por %p28_p2, %p27_p1  ;;  %127 = sbr.rel (%p1613_p4) target bundleno = 50 (0x32), region = 24 }
   0xe   : > { %130 = sbr.rel (!%p29_p3) target bundleno = 50 (0x32), region = 28  ;;  %s132_s20 = sand.u32 (%p29_p3), 1, %s2143_s13  }
   0xf   : > { %s1787_s21 = sshll.u32 (%p29_p3), %s2147_s14, 7  ;;  %s1614_s22 = sshll.u32 (%p29_p3), %s132_s20, 9 }
  0x10   : > { %s2204_s25 = scalar_lea.vmem (%p29_p3), %s2788_s0, %s1787_s21  ;;  %s2209_s26 = scalar_lea.vmem (%p29_p3), [#allocation2], %s1614_s22 }
  0x11   : > { %v151_v0 = vld [vmem:[%s2204_s25] sm:$0xff] (%p29_p3)  ;;  %v153_v1 = vld [vmem:[%s2204_s25 + $0x8] sm:$0xff] (%p29_p3)  ;;  %v155_v2 = vld [vmem:[%s2204_s25 + $0x10] sm:$0xff] (%p29_p3) }
  0x12   : > { %152 = vst [vmem:[%s2209_s26] sm:$0xff] (%p29_p3), %v151_v0  ;;  %154 = vst [vmem:[%s2209_s26 + $0x8] sm:$0xff] (%p29_p3), %v153_v1  ;;  %v157_v3 = vld [vmem:[%s2204_s25 + $0x18] sm:$0xff] (%p29_p3)  ;;  %v159_v4 = vld [vmem:[%s2204_s25 + $0x20] sm:$0xff] (%p29_p3) }
  0x13   : > { %156 = vst [vmem:[%s2209_s26 + $0x10] sm:$0xff] (%p29_p3), %v155_v2  ;;  %v161_v5 = vld [vmem:[%s2204_s25 + $0x28] sm:$0xff] (%p29_p3)  ;;  %158 = vst [vmem:[%s2209_s26 + $0x18] sm:$0xff] (%p29_p3), %v157_v3  ;;  %v163_v6 = vld [vmem:[%s2204_s25 + $0x30] sm:$0xff] (%p29_p3) }
  0x14   : > { %160 = vst [vmem:[%s2209_s26 + $0x20] sm:$0xff] (%p29_p3), %v159_v4  ;;  %162 = vst [vmem:[%s2209_s26 + $0x28] sm:$0xff] (%p29_p3), %v161_v5  ;;  %v165_v7 = vld [vmem:[%s2204_s25 + $0x38] sm:$0xff] (%p29_p3)  ;;  %v167_v8 = vld [vmem:[%s2204_s25 + $0x40] sm:$0xff] (%p29_p3) }
  0x15   : > { %164 = vst [vmem:[%s2209_s26 + $0x30] sm:$0xff] %v163_v6  ;;  %166 = vst [vmem:[%s2209_s26 + $0x38] sm:$0xff] %v165_v7  ;;  %v169_v9 = vld [vmem:[%s2204_s25 + $0x48] sm:$0xff]  ;;  %v171_v10 = vld [vmem:[%s2204_s25 + $0x50] sm:$0xff] }
  0x16   : > { %168 = vst [vmem:[%s2209_s26 + $0x40] sm:$0xff] %v167_v8  ;;  %v173_v11 = vld [vmem:[%s2204_s25 + $0x58] sm:$0xff]  ;;  %170 = vst [vmem:[%s2209_s26 + $0x48] sm:$0xff] %v169_v9  ;;  %v175_v12 = vld [vmem:[%s2204_s25 + $0x60] sm:$0xff] }
  0x17   : > { %172 = vst [vmem:[%s2209_s26 + $0x50] sm:$0xff] %v171_v10  ;;  %174 = vst [vmem:[%s2209_s26 + $0x58] sm:$0xff] %v173_v11  ;;  %v177_v13 = vld [vmem:[%s2204_s25 + $0x68] sm:$0xff]  ;;  %v179_v14 = vld [vmem:[%s2204_s25 + $0x70] sm:$0xff] }
  0x18   : > { %176 = vst [vmem:[%s2209_s26 + $0x60] sm:$0xff] %v175_v12  ;;  %178 = vst [vmem:[%s2209_s26 + $0x68] sm:$0xff] %v177_v13  ;;  %v181_v15 = vld [vmem:[%s2204_s25 + $0x78] sm:$0xff]  ;;  %v183_v16 = vld [vmem:[%s2204_s25 + $0x100] sm:$0xff] }
  0x19   : > { %180 = vst [vmem:[%s2209_s26 + $0x70] sm:$0xff] %v179_v14  ;;  %v185_v17 = vld [vmem:[%s2204_s25 + $0x108] sm:$0xff]  ;;  %182 = vst [vmem:[%s2209_s26 + $0x78] sm:$0xff] %v181_v15  ;;  %v187_v18 = vld [vmem:[%s2204_s25 + $0x110] sm:$0xff] }
  0x1a   : > { %184 = vst [vmem:[%s2209_s26 + $0x80] sm:$0xff] %v183_v16  ;;  %186 = vst [vmem:[%s2209_s26 + $0x88] sm:$0xff] %v185_v17  ;;  %v189_v19 = vld [vmem:[%s2204_s25 + $0x118] sm:$0xff]  ;;  %v191_v20 = vld [vmem:[%s2204_s25 + $0x120] sm:$0xff] }
  0x1b   : > { %188 = vst [vmem:[%s2209_s26 + $0x90] sm:$0xff] %v187_v18  ;;  %190 = vst [vmem:[%s2209_s26 + $0x98] sm:$0xff] %v189_v19  ;;  %v193_v21 = vld [vmem:[%s2204_s25 + $0x128] sm:$0xff]  ;;  %v195_v22 = vld [vmem:[%s2204_s25 + $0x130] sm:$0xff] }
  0x1c   : > { %192 = vst [vmem:[%s2209_s26 + $0xa0] sm:$0xff] %v191_v20  ;;  %v197_v23 = vld [vmem:[%s2204_s25 + $0x138] sm:$0xff]  ;;  %194 = vst [vmem:[%s2209_s26 + $0xa8] sm:$0xff] %v193_v21  ;;  %v199_v24 = vld [vmem:[%s2204_s25 + $0x140] sm:$0xff] }
  0x1d   : > { %196 = vst [vmem:[%s2209_s26 + $0xb0] sm:$0xff] %v195_v22  ;;  %198 = vst [vmem:[%s2209_s26 + $0xb8] sm:$0xff] %v197_v23  ;;  %v201_v25 = vld [vmem:[%s2204_s25 + $0x148] sm:$0xff]  ;;  %v203_v26 = vld [vmem:[%s2204_s25 + $0x150] sm:$0xff] }
  0x1e   : > { %200 = vst [vmem:[%s2209_s26 + $0xc0] sm:$0xff] %v199_v24  ;;  %202 = vst [vmem:[%s2209_s26 + $0xc8] sm:$0xff] %v201_v25  ;;  %v205_v27 = vld [vmem:[%s2204_s25 + $0x158] sm:$0xff]  ;;  %v207_v28 = vld [vmem:[%s2204_s25 + $0x160] sm:$0xff] }
  0x1f   : > { %204 = vst [vmem:[%s2209_s26 + $0xd0] sm:$0xff] %v203_v26  ;;  %v209_v29 = vld [vmem:[%s2204_s25 + $0x168] sm:$0xff]  ;;  %206 = vst [vmem:[%s2209_s26 + $0xd8] sm:$0xff] %v205_v27  ;;  %v211_v30 = vld [vmem:[%s2204_s25 + $0x170] sm:$0xff] }
  0x20   : > { %208 = vst [vmem:[%s2209_s26 + $0xe0] sm:$0xff] %v207_v28  ;;  %210 = vst [vmem:[%s2209_s26 + $0xe8] sm:$0xff] %v209_v29  ;;  %v213_v31 = vld [vmem:[%s2204_s25 + $0x178] sm:$0xff]  ;;  %v215_v32 = vld [vmem:[%s2204_s25 + $0x200] sm:$0xff] }
  0x21   : > { %212 = vst [vmem:[%s2209_s26 + $0xf0] sm:$0xff] %v211_v30  ;;  %214 = vst [vmem:[%s2209_s26 + $0xf8] sm:$0xff] %v213_v31  ;;  %v217_v33 = vld [vmem:[%s2204_s25 + $0x208] sm:$0xff]  ;;  %v219_v34 = vld [vmem:[%s2204_s25 + $0x210] sm:$0xff] }
  0x22   : > { %216 = vst [vmem:[%s2209_s26 + $0x100] sm:$0xff] %v215_v32  ;;  %v221_v35 = vld [vmem:[%s2204_s25 + $0x218] sm:$0xff]  ;;  %218 = vst [vmem:[%s2209_s26 + $0x108] sm:$0xff] %v217_v33  ;;  %v223_v36 = vld [vmem:[%s2204_s25 + $0x220] sm:$0xff] }
  0x23   : > { %220 = vst [vmem:[%s2209_s26 + $0x110] sm:$0xff] %v219_v34  ;;  %222 = vst [vmem:[%s2209_s26 + $0x118] sm:$0xff] %v221_v35  ;;  %v225_v37 = vld [vmem:[%s2204_s25 + $0x228] sm:$0xff]  ;;  %v227_v38 = vld [vmem:[%s2204_s25 + $0x230] sm:$0xff] }
  0x24   : > { %224 = vst [vmem:[%s2209_s26 + $0x120] sm:$0xff] %v223_v36  ;;  %226 = vst [vmem:[%s2209_s26 + $0x128] sm:$0xff] %v225_v37  ;;  %v229_v39 = vld [vmem:[%s2204_s25 + $0x238] sm:$0xff]  ;;  %v231_v40 = vld [vmem:[%s2204_s25 + $0x240] sm:$0xff] }
  0x25   : > { %228 = vst [vmem:[%s2209_s26 + $0x130] sm:$0xff] %v227_v38  ;;  %v233_v41 = vld [vmem:[%s2204_s25 + $0x248] sm:$0xff]  ;;  %230 = vst [vmem:[%s2209_s26 + $0x138] sm:$0xff] %v229_v39  ;;  %v235_v42 = vld [vmem:[%s2204_s25 + $0x250] sm:$0xff] }
  0x26   : > { %232 = vst [vmem:[%s2209_s26 + $0x140] sm:$0xff] %v231_v40  ;;  %234 = vst [vmem:[%s2209_s26 + $0x148] sm:$0xff] %v233_v41  ;;  %v237_v43 = vld [vmem:[%s2204_s25 + $0x258] sm:$0xff]  ;;  %v239_v44 = vld [vmem:[%s2204_s25 + $0x260] sm:$0xff] }
  0x27   : > { %236 = vst [vmem:[%s2209_s26 + $0x150] sm:$0xff] %v235_v42  ;;  %238 = vst [vmem:[%s2209_s26 + $0x158] sm:$0xff] %v237_v43  ;;  %v241_v45 = vld [vmem:[%s2204_s25 + $0x268] sm:$0xff]  ;;  %v243_v46 = vld [vmem:[%s2204_s25 + $0x270] sm:$0xff] }
  0x28   : > { %240 = vst [vmem:[%s2209_s26 + $0x160] sm:$0xff] %v239_v44  ;;  %v245_v47 = vld [vmem:[%s2204_s25 + $0x278] sm:$0xff]  ;;  %242 = vst [vmem:[%s2209_s26 + $0x168] sm:$0xff] %v241_v45  ;;  %v247_v48 = vld [vmem:[%s2204_s25 + $0x300] sm:$0xff] }
  0x29   : > { %244 = vst [vmem:[%s2209_s26 + $0x170] sm:$0xff] %v243_v46  ;;  %246 = vst [vmem:[%s2209_s26 + $0x178] sm:$0xff] %v245_v47  ;;  %v249_v49 = vld [vmem:[%s2204_s25 + $0x308] sm:$0xff]  ;;  %v251_v50 = vld [vmem:[%s2204_s25 + $0x310] sm:$0xff] }
  0x2a   : > { %248 = vst [vmem:[%s2209_s26 + $0x180] sm:$0xff] %v247_v48  ;;  %250 = vst [vmem:[%s2209_s26 + $0x188] sm:$0xff] %v249_v49  ;;  %v253_v51 = vld [vmem:[%s2204_s25 + $0x318] sm:$0xff]  ;;  %v255_v52 = vld [vmem:[%s2204_s25 + $0x320] sm:$0xff] }
  0x2b   : > { %252 = vst [vmem:[%s2209_s26 + $0x190] sm:$0xff] %v251_v50  ;;  %v257_v53 = vld [vmem:[%s2204_s25 + $0x328] sm:$0xff]  ;;  %254 = vst [vmem:[%s2209_s26 + $0x198] sm:$0xff] %v253_v51  ;;  %v259_v54 = vld [vmem:[%s2204_s25 + $0x330] sm:$0xff] }
  0x2c   : > { %256 = vst [vmem:[%s2209_s26 + $0x1a0] sm:$0xff] %v255_v52  ;;  %258 = vst [vmem:[%s2209_s26 + $0x1a8] sm:$0xff] %v257_v53  ;;  %v261_v55 = vld [vmem:[%s2204_s25 + $0x338] sm:$0xff]  ;;  %v263_v56 = vld [vmem:[%s2204_s25 + $0x340] sm:$0xff] }
  0x2d   : > { %260 = vst [vmem:[%s2209_s26 + $0x1b0] sm:$0xff] %v259_v54  ;;  %262 = vst [vmem:[%s2209_s26 + $0x1b8] sm:$0xff] %v261_v55  ;;  %v265_v57 = vld [vmem:[%s2204_s25 + $0x348] sm:$0xff]  ;;  %v267_v58 = vld [vmem:[%s2204_s25 + $0x350] sm:$0xff] }
  0x2e   : > { %264 = vst [vmem:[%s2209_s26 + $0x1c0] sm:$0xff] %v263_v56  ;;  %v269_v59 = vld [vmem:[%s2204_s25 + $0x358] sm:$0xff]  ;;  %266 = vst [vmem:[%s2209_s26 + $0x1c8] sm:$0xff] %v265_v57  ;;  %v271_v60 = vld [vmem:[%s2204_s25 + $0x360] sm:$0xff] }
  0x2f   : > { %268 = vst [vmem:[%s2209_s26 + $0x1d0] sm:$0xff] %v267_v58  ;;  %270 = vst [vmem:[%s2209_s26 + $0x1d8] sm:$0xff] %v269_v59  ;;  %v273_v61 = vld [vmem:[%s2204_s25 + $0x368] sm:$0xff]  ;;  %v275_v62 = vld [vmem:[%s2204_s25 + $0x370] sm:$0xff] }
  0x30   : > { %272 = vst [vmem:[%s2209_s26 + $0x1e0] sm:$0xff] %v271_v60  ;;  %274 = vst [vmem:[%s2209_s26 + $0x1e8] sm:$0xff] %v273_v61  ;;  %v277_v63 = vld [vmem:[%s2204_s25 + $0x378] sm:$0xff] }
  0x31   : > { %276 = vst [vmem:[%s2209_s26 + $0x1f0] sm:$0xff] %v275_v62  ;;  %278 = vst [vmem:[%s2209_s26 + $0x1f8] sm:$0xff] %v277_v63 }
  0x32 PF: > { %p1618_p5 = scmp.ge.s32.totalorder %s2147_s14, 1  ;;  %p283_p6 = scmp.lt.s32.totalorder %s2147_s14, 3 }
  0x34   : > { %p284_p7 = pnand %p1618_p5, %p283_p6 }
  0x35   : > { %v2341_v0 = vld [vmem:[%s2789_s1 + $0x40] sm:$0xff] (!%p284_p7)   ;;  %v2149_v1 = vmov (!%p284_p7), 0   ;;  %v2359_v4 = vld [vmem:[%s2789_s1 + $0x48] sm:$0xff] (!%p284_p7)   ;;  %v2377_v7 = vld [vmem:[%s2789_s1 + $0x50] sm:$0xff] (!%p284_p7)   ;;  %s290_s9 = sand.u32 (!%p284_p7), 1, %s2139_s12   ;;  %vm613_vm0 = vcmask (!%p284_p7), 130048  }
  0x36   : > { %287 = sbr.rel (%p284_p7) target bundleno = 447 (0x1bf), region = 51  ;;  %691 = vmatprep.subr.bf16.mxu1 (!%p284_p7), %v2149_v1  ;;  %v2347_v2 = vld [vmem:[%s2789_s1 + $0x80] sm:$0xff] (!%p284_p7)   ;;  %1819 = vmatprep.subr.bf16.mxu0 (!%p284_p7), %v2341_v0  ;;  %v2366_v5 = vld [vmem:[%s2789_s1 + $0x88] sm:$0xff] (!%p284_p7)   ;;  %v2383_v8 = vld [vmem:[%s2789_s1 + $0x90] sm:$0xff] (!%p284_p7)   ;;  %s1619_s20 = sshll.u32 (!%p284_p7), %s290_s9, 9 }
  0x37   : > { %v2353_v3 = vld [vmem:[%s2789_s1] sm:$0xff] (!%p284_p7)   ;;  %692 = vmatpush1.bf16.msra.mxu1 (!%p284_p7), %v2347_v2  ;;  %v2372_v6 = vld [vmem:[%s2789_s1 + $0x8] sm:$0xff] (!%p284_p7)   ;;  %v2390_v9 = vld [vmem:[%s2789_s1 + $0x10] sm:$0xff] (!%p284_p7)   ;;  %s2474_s30 = scalar_lea.vmem (!%p284_p7), [#allocation2], %s1619_s20  ;;  %s1620_s10 = sshll.u32 (!%p284_p7), %s1610_s15, 3 }
  0x38   : > { %1820 = vmatpush3.bf16.msra.mxu0 (!%p284_p7), %v2353_v3  ;;  %693 = vmatprep.subr.bf16.mxu1 (!%p284_p7), %v2149_v1  ;;  %v2396_v10 = vld [vmem:[%s2789_s1 + $0x58] sm:$0xff] (!%p284_p7)   ;;  %v2415_v13 = vld [vmem:[%s2789_s1 + $0x60] sm:$0xff] (!%p284_p7)   ;;  %v2435_v16 = vld [vmem:[%s2789_s1 + $0x68] sm:$0xff] (!%p284_p7)   ;;  %p315_p8 = scmp.lt.s32.totalorder (!%p284_p7), %s1620_s10, 15 }
  0x39   : > { %1821 = vmatprep.subr.bf16.mxu0 (!%p284_p7), %v2359_v4  ;;  %v2402_v11 = vld [vmem:[%s2789_s1 + $0x98] sm:$0xff] (!%p284_p7)   ;;  %v2421_v14 = vld [vmem:[%s2789_s1 + $0xa0] sm:$0xff] (!%p284_p7)   ;;  %v2441_v17 = vld [vmem:[%s2789_s1 + $0xa8] sm:$0xff] (!%p284_p7)  }
  0x3a   : > { %v2409_v12 = vld [vmem:[%s2789_s1 + $0x18] sm:$0xff] (!%p284_p7)   ;;  %v2428_v15 = vld [vmem:[%s2789_s1 + $0x20] sm:$0xff] (!%p284_p7)   ;;  %v2448_v18 = vld [vmem:[%s2789_s1 + $0x28] sm:$0xff] (!%p284_p7)  }
  0x3b   : > { %694 = vmatpush1.bf16.msra.mxu1 (!%p284_p7), %v2366_v5  ;;  %v2454_v19 = vld [vmem:[%s2789_s1 + $0x70] sm:$0xff] (!%p284_p7)   ;;  %v2472_v22 = vld [vmem:[%s2789_s1 + $0x78] sm:$0xff] (!%p284_p7)   ;;  %v2499_v28 = vld [vmem:[%s2789_s1 + $0xc0] sm:$0xff] (!%p284_p7)  }
  0x3c   : > { %1822 = vmatpush3.bf16.msra.mxu0 (!%p284_p7), %v2372_v6  ;;  %695 = vmatprep.subr.bf16.mxu1 (!%p284_p7), %v2149_v1  ;;  %v2459_v20 = vld [vmem:[%s2789_s1 + $0xb0] sm:$0xff] (!%p284_p7)   ;;  %v2482_v24 = vld [vmem:[%s2789_s1 + $0xb8] sm:$0xff] (!%p284_p7)  }
  0x3d   : > { %1823 = vmatprep.subr.bf16.mxu0 %v2377_v7  ;;  %v2465_v21 = vld [vmem:[%s2789_s1 + $0x30] sm:$0xff]   ;;  %v2034_v25 = vld [vmem:[%s2474_s30 + $0xc] ss:$16 sps:$4 sm:$0xff]   ;;  %v2032_v30 = vld [vmem:[%s2474_s30 + $0x8] ss:$16 sps:$4 sm:$0xff]   ;;  %s2796_s10 = smov (!%p315_p8, %s1620_s10), 15 }
  0x3e   : > { %v2030_v23 = vld [vmem:[%s2474_s30 + $0x4] ss:$16 sps:$4 sm:$0xff]   ;;  %v2490_v26 = vld [vmem:[%s2789_s1 + $0x38] sm:$0xff]   ;;  %1663 = vmatprep.mubr.msk.bf16.mxu1 %vm613_vm0, %v2034_v25  ;;  %v2028_v27 = vld [vmem:[%s2474_s30] ss:$16 sps:$4 sm:$0xff]   ;;  %s1621_s14 = sshll.u32 %s2796_s10, 2 }
  0x3f   : > { %696 = vmatpush1.bf16.msra.mxu1 %v2383_v8  ;;  %658 = vmatprep.mubr.bf16.mxu0 %v2030_v23  ;;  %v2035_v29 = vld [vmem:[%s2474_s30 + $0x24] ss:$16 sps:$4 sm:$0xff]   ;;  %v2038_v31 = vld [vmem:[%s2474_s30 + $0x2c] ss:$16 sps:$4 sm:$0xff]   ;;  %v2037_v32 = vld [vmem:[%s2474_s30 + $0x20] ss:$16 sps:$4 sm:$0xff]   ;;  %s2760_s20 = scalar_lea.vmem %s2791_s3, %s1621_s14 }
  0x40   : > { %1824 = vmatpush3.bf16.msra.mxu0 %v2390_v9  ;;  %697 = vmatprep.subr.bf16.mxu1 %v2149_v1  ;;  %v2041_v33 = vld [vmem:[%s2474_s30 + $0x44] ss:$16 sps:$4 sm:$0xff]   ;;  %v2040_v34 = vld [vmem:[%s2474_s30 + $0x28] ss:$16 sps:$4 sm:$0xff]   ;;  %v2044_v35 = vld [vmem:[%s2474_s30 + $0x4c] ss:$16 sps:$4 sm:$0xff]  }
  0x41   : > { %1825 = vmatprep.subr.bf16.mxu0 %v2396_v10  ;;  %v2043_v36 = vld [vmem:[%s2474_s30 + $0x40] ss:$16 sps:$4 sm:$0xff]   ;;  %v2047_v37 = vld [vmem:[%s2474_s30 + $0x64] ss:$16 sps:$4 sm:$0xff]   ;;  %v2046_v38 = vld [vmem:[%s2474_s30 + $0x48] ss:$16 sps:$4 sm:$0xff]  }
  0x42   : > { %v2050_v39 = vld [vmem:[%s2474_s30 + $0x6c] ss:$16 sps:$4 sm:$0xff]   ;;  %v2049_v40 = vld [vmem:[%s2474_s30 + $0x60] ss:$16 sps:$4 sm:$0xff]   ;;  %v2055_v41 = vld [vmem:[%s2474_s30 + $0x84] ss:$16 sps:$4 sm:$0xff]  }
  0x43   : > { %698 = vmatpush1.bf16.msra.mxu1 %v2402_v11  ;;  %v2052_v42 = vld [vmem:[%s2474_s30 + $0x68] ss:$16 sps:$4 sm:$0xff]   ;;  %v2058_v43 = vld [vmem:[%s2474_s30 + $0x8c] ss:$16 sps:$4 sm:$0xff]   ;;  %v2053_v44 = vld [vmem:[%s2474_s30 + $0x80] ss:$16 sps:$4 sm:$0xff]  }
  0x44   : > { %1826 = vmatpush3.bf16.msra.mxu0 %v2409_v12  ;;  %699 = vmatprep.subr.bf16.mxu1 %v2149_v1  ;;  %v2059_v45 = vld [vmem:[%s2474_s30 + $0xa4] ss:$16 sps:$4 sm:$0xff]   ;;  %v2056_v46 = vld [vmem:[%s2474_s30 + $0x88] ss:$16 sps:$4 sm:$0xff]   ;;  %v2061_v47 = vld [vmem:[%s2474_s30 + $0xa0] ss:$16 sps:$4 sm:$0xff]  }
  0x45   : > { %1827 = vmatprep.subr.bf16.mxu0 %v2415_v13  ;;  %v2062_v48 = vld [vmem:[%s2474_s30 + $0xac] ss:$16 sps:$4 sm:$0xff]   ;;  %v2065_v49 = vld [vmem:[%s2474_s30 + $0xc4] ss:$16 sps:$4 sm:$0xff]   ;;  %v2064_v50 = vld [vmem:[%s2474_s30 + $0xa8] ss:$16 sps:$4 sm:$0xff]  }
  0x46   : > { %v2067_v51 = vld [vmem:[%s2474_s30 + $0xc0] ss:$16 sps:$4 sm:$0xff]   ;;  %v2068_v52 = vld [vmem:[%s2474_s30 + $0xcc] ss:$16 sps:$4 sm:$0xff]   ;;  %v2071_v53 = vld [vmem:[%s2474_s30 + $0xe4] ss:$16 sps:$4 sm:$0xff]  }
  0x47   : > { %700 = vmatpush1.bf16.msra.mxu1 %v2421_v14  ;;  %v2070_v54 = vld [vmem:[%s2474_s30 + $0xc8] ss:$16 sps:$4 sm:$0xff]   ;;  %v2073_v55 = vld [vmem:[%s2474_s30 + $0xe0] ss:$16 sps:$4 sm:$0xff]   ;;  %v2074_v56 = vld [vmem:[%s2474_s30 + $0xec] ss:$16 sps:$4 sm:$0xff]  }
  0x48   : > { %1828 = vmatpush3.bf16.msra.mxu0 %v2428_v15  ;;  %701 = vmatprep.subr.bf16.mxu1 %v2149_v1  ;;  %v2079_v57 = vld [vmem:[%s2474_s30 + $0x104] ss:$16 sps:$4 sm:$0xff]   ;;  %v2076_v58 = vld [vmem:[%s2474_s30 + $0xe8] ss:$16 sps:$4 sm:$0xff]   ;;  %v2082_v59 = vld [vmem:[%s2474_s30 + $0x10c] ss:$16 sps:$4 sm:$0xff]  }
  0x49   : > { %1829 = vmatprep.subr.bf16.mxu0 %v2435_v16  ;;  %v2077_v60 = vld [vmem:[%s2474_s30 + $0x100] ss:$16 sps:$4 sm:$0xff]   ;;  %v2083_v61 = vld [vmem:[%s2474_s30 + $0x124] ss:$16 sps:$4 sm:$0xff]   ;;  %v2124_v25 = vld [vmem:[%s2474_s30 + $0x1e8] ss:$16 sps:$4 sm:$0xff]  }
  0x4a   : > { %v2085_v62 = vld [vmem:[%s2474_s30 + $0x120] ss:$16 sps:$4 sm:$0xff]   ;;  %v2089_v63 = vld [vmem:[%s2474_s30 + $0x144] ss:$16 sps:$4 sm:$0xff]  }
  0x4b   : > { %702 = vmatpush1.bf16.msra.mxu1 %v2441_v17  ;;  %v2121_v23 = vld [vmem:[%s2474_s30 + $0x1e0] ss:$16 sps:$4 sm:$0xff]  }
  0x4c   : > { %1830 = vmatpush3.bf16.msra.mxu0 %v2448_v18  ;;  %703 = vmatprep.subr.bf16.mxu1 %v2149_v1 }
  0x4d   : > { %1831 = vmatprep.subr.bf16.mxu0 %v2454_v19 }
  0x4f   : > { %704 = vmatpush1.bf16.msra.mxu1 %v2459_v20 }
  0x50   : > { %1832 = vmatpush3.bf16.msra.mxu0 %v2465_v21  ;;  %705 = vmatprep.subr.bf16.mxu1 %v2149_v1 }
  0x51   : > { %1833 = vmatprep.subr.bf16.mxu0 %v2472_v22 }
  0x53   : > { %706 = vmatpush1.bf16.msra.mxu1 %v2482_v24 }
  0x54   : > { %1834 = vmatpush3.bf16.msra.mxu0 %v2490_v26  ;;  %707 = vmatprep.subr.bf16.mxu1 %v2149_v1 }
  0x55   : > { %1859 = vmatprep.subr.bf16.mxu0 %v2341_v0 }
  0x57   : > { %659 = vmatmul.mubr.bf16.vlgmr.msra.gmra.mrb[0].mxu0 %v2028_v27  ;;  %708 = vmatpush1.bf16.msra.mxu1 %v2499_v28 }
  0x58   : > { %926 = vmatprep.subr.bf16.mxu1 %v2149_v1  ;;  %1860 = vmatpush3.bf16.msra.mxu0 %v2353_v3 }
  0x59   : > { %1861 = vmatprep.subr.bf16.mxu0 %v2359_v4  ;;  %666 = vmatprep.mubr.bf16.mxu0 %v2035_v29 }
  0x5a   : > { %724 = vmatmul.mubr.bf16.vlgmr.msra.gmra.mrb[0].mxu1 %v2032_v30 }
  0x5b   : > { %927 = vmatpush1.bf16.msra.mxu1 %v2347_v2  ;;  %1664 = vmatprep.mubr.msk.bf16.mxu1 %vm613_vm0, %v2038_v31 }
  0x5c   : > { %928 = vmatprep.subr.bf16.mxu1 %v2149_v1  ;;  %1862 = vmatpush3.bf16.msra.mxu0 %v2372_v6 }
  0x5d   : > { %1863 = vmatprep.subr.bf16.mxu0 %v2377_v7 }
  0x5f   : > { %929 = vmatpush1.bf16.msra.mxu1 %v2366_v5  ;;  %667 = vmatmul.mubr.bf16.gmra.mrb[4].mxu0 %v2037_v32 }
  0x60   : > { %930 = vmatprep.subr.bf16.mxu1 %v2149_v1  ;;  %1864 = vmatpush3.bf16.msra.mxu0 %v2390_v9 }
  0x61   : > { %1865 = vmatprep.subr.bf16.mxu0 %v2396_v10  ;;  %674 = vmatprep.mubr.bf16.mxu0 %v2041_v33 }
  0x62   : > { %732 = vmatmul.mubr.bf16.gmra.mrb[4].mxu1 %v2040_v34 }
  0x63   : > { %931 = vmatpush1.bf16.msra.mxu1 %v2383_v8  ;;  %1665 = vmatprep.mubr.msk.bf16.mxu1 %vm613_vm0, %v2044_v35 }
  0x64   : > { %932 = vmatprep.subr.bf16.mxu1 %v2149_v1  ;;  %1866 = vmatpush3.bf16.msra.mxu0 %v2409_v12 }
  0x65   : > { %1867 = vmatprep.subr.bf16.mxu0 %v2415_v13 }
  0x67   : > { %933 = vmatpush1.bf16.msra.mxu1 %v2402_v11  ;;  %675 = vmatmul.mubr.bf16.gmra.mrb[8].mxu0 %v2043_v36 }
  0x68   : > { %934 = vmatprep.subr.bf16.mxu1 %v2149_v1  ;;  %1868 = vmatpush3.bf16.msra.mxu0 %v2428_v15 }
  0x69   : > { %1869 = vmatprep.subr.bf16.mxu0 %v2435_v16  ;;  %682 = vmatprep.mubr.bf16.mxu0 %v2047_v37 }
  0x6a   : > { %740 = vmatmul.mubr.bf16.gmra.mrb[8].mxu1 %v2046_v38 }
  0x6b   : > { %935 = vmatpush1.bf16.msra.mxu1 %v2421_v14  ;;  %1666 = vmatprep.mubr.msk.bf16.mxu1 %vm613_vm0, %v2050_v39 }
  0x6c   : > { %936 = vmatprep.subr.bf16.mxu1 %v2149_v1  ;;  %1870 = vmatpush3.bf16.msra.mxu0 %v2448_v18 }
  0x6d   : > { %1871 = vmatprep.subr.bf16.mxu0 %v2454_v19 }
  0x6f   : > { %937 = vmatpush1.bf16.msra.mxu1 %v2441_v17  ;;  %683 = vmatmul.mubr.bf16.gmra.mrb[12].mxu0 %v2049_v40 }
  0x70   : > { %938 = vmatprep.subr.bf16.mxu1 %v2149_v1  ;;  %1872 = vmatpush3.bf16.msra.mxu0 %v2465_v21 }
  0x71   : > { %1873 = vmatprep.subr.bf16.mxu0 %v2472_v22  ;;  %893 = vmatprep.mubr.bf16.mxu0 %v2055_v41 }
  0x72   : > { %748 = vmatmul.mubr.bf16.gmra.mrb[12].mxu1 %v2052_v42 }
  0x73   : > { %939 = vmatpush1.bf16.msra.mxu1 %v2459_v20  ;;  %1699 = vmatprep.mubr.msk.bf16.mxu1 %vm613_vm0, %v2058_v43 }
  0x74   : > { %940 = vmatprep.subr.bf16.mxu1 %v2149_v1  ;;  %1874 = vmatpush3.bf16.msra.mxu0 %v2490_v26 }
  0x75   : > { %1899 = vmatprep.subr.bf16.mxu0 %v2341_v0 }
  0x77   : > { %941 = vmatpush1.bf16.msra.mxu1 %v2482_v24  ;;  %894 = vmatmul.mubr.bf16.vlgmr.msra.gmra.mrb[16].mxu0 %v2053_v44 }
  0x78   : > { %942 = vmatprep.subr.bf16.mxu1 %v2149_v1  ;;  %1900 = vmatpush3.bf16.msra.mxu0 %v2353_v3 }
  0x79   : > { %901 = vmatprep.mubr.bf16.mxu0 %v2059_v45  ;;  %1901 = vmatprep.subr.bf16.mxu0 %v2359_v4 }
  0x7b   : > { %943 = vmatpush1.bf16.msra.mxu1 %v2499_v28 }
  0x7c   : > { %1169 = vmatprep.subr.bf16.mxu1 %v2149_v1  ;;  %1902 = vmatpush3.bf16.msra.mxu0 %v2372_v6 }
  0x7d   : > { %1903 = vmatprep.subr.bf16.mxu0 %v2377_v7 }
  0x7e   : > { %959 = vmatmul.mubr.bf16.vlgmr.msra.gmra.mrb[16].mxu1 %v2056_v46 }
  0x7f   : > { %1170 = vmatpush1.bf16.msra.mxu1 %v2347_v2  ;;  %902 = vmatmul.mubr.bf16.gmra.mrb[20].mxu0 %v2061_v47 }
  0x80   : > { %1171 = vmatprep.subr.bf16.mxu1 %v2149_v1  ;;  %1700 = vmatprep.mubr.msk.bf16.mxu1 %vm613_vm0, %v2062_v48 }
  0x81   : > { %1904 = vmatpush3.bf16.msra.mxu0 %v2390_v9  ;;  %909 = vmatprep.mubr.bf16.mxu0 %v2065_v49 }
  0x82   : > { %1905 = vmatprep.subr.bf16.mxu0 %v2396_v10 }
  0x83   : > { %1172 = vmatpush1.bf16.msra.mxu1 %v2366_v5 }
  0x84   : > { %1173 = vmatprep.subr.bf16.mxu1 %v2149_v1 }
  0x85   : > { %1906 = vmatpush3.bf16.msra.mxu0 %v2409_v12 }
  0x86   : > { %967 = vmatmul.mubr.bf16.gmra.mrb[20].mxu1 %v2064_v50  ;;  %1907 = vmatprep.subr.bf16.mxu0 %v2415_v13 }
  0x87   : > { %1174 = vmatpush1.bf16.msra.mxu1 %v2383_v8  ;;  %910 = vmatmul.mubr.bf16.gmra.mrb[24].mxu0 %v2067_v51 }
  0x88   : > { %1175 = vmatprep.subr.bf16.mxu1 %v2149_v1  ;;  %1701 = vmatprep.mubr.msk.bf16.mxu1 %vm613_vm0, %v2068_v52 }
  0x89   : > { %1908 = vmatpush3.bf16.msra.mxu0 %v2428_v15  ;;  %917 = vmatprep.mubr.bf16.mxu0 %v2071_v53 }
  0x8a   : > { %1909 = vmatprep.subr.bf16.mxu0 %v2435_v16 }
  0x8b   : > { %1176 = vmatpush1.bf16.msra.mxu1 %v2402_v11 }
  0x8c   : > { %1177 = vmatprep.subr.bf16.mxu1 %v2149_v1 }
  0x8d   : > { %1910 = vmatpush3.bf16.msra.mxu0 %v2448_v18 }
  0x8e   : > { %975 = vmatmul.mubr.bf16.gmra.mrb[24].mxu1 %v2070_v54  ;;  %1911 = vmatprep.subr.bf16.mxu0 %v2454_v19 }
  0x8f   : > { %1178 = vmatpush1.bf16.msra.mxu1 %v2421_v14  ;;  %918 = vmatmul.mubr.bf16.gmra.mrb[28].mxu0 %v2073_v55 }
  0x90   : > { %1179 = vmatprep.subr.bf16.mxu1 %v2149_v1  ;;  %1702 = vmatprep.mubr.msk.bf16.mxu1 %vm613_vm0, %v2074_v56 }
  0x91   : > { %1912 = vmatpush3.bf16.msra.mxu0 %v2465_v21  ;;  %1136 = vmatprep.mubr.bf16.mxu0 %v2079_v57 }
  0x92   : > { %1913 = vmatprep.subr.bf16.mxu0 %v2472_v22 }
  0x93   : > { %1180 = vmatpush1.bf16.msra.mxu1 %v2441_v17 }
  0x94   : > { %1181 = vmatprep.subr.bf16.mxu1 %v2149_v1 }
  0x95   : > { %1914 = vmatpush3.bf16.msra.mxu0 %v2490_v26 }
  0x96   : > { %983 = vmatmul.mubr.bf16.gmra.mrb[28].mxu1 %v2076_v58  ;;  %1939 = vmatprep.subr.bf16.mxu0 %v2341_v0  ;;  %v2080_v0 = vld [vmem:[%s2474_s30 + $0x108] ss:$16 sps:$4 sm:$0xff]  }
  0x97   : > { %1182 = vmatpush1.bf16.msra.mxu1 %v2459_v20  ;;  %1735 = vmatprep.mubr.msk.bf16.mxu1 %vm613_vm0, %v2082_v59 }
  0x98   : > { %1183 = vmatprep.subr.bf16.mxu1 %v2149_v1  ;;  %1137 = vmatmul.mubr.bf16.vlgmr.msra.gmra.mrb[32].mxu0 %v2077_v60 }
  0x99   : > { %1940 = vmatpush3.bf16.msra.mxu0 %v2353_v3  ;;  %1144 = vmatprep.mubr.bf16.mxu0 %v2083_v61  ;;  %v2086_v3 = vld [vmem:[%s2474_s30 + $0x12c] ss:$16 sps:$4 sm:$0xff]  }
  0x9a   : > { %1941 = vmatprep.subr.bf16.mxu0 %v2359_v4  ;;  %v2091_v4 = vld [vmem:[%s2474_s30 + $0x140] ss:$16 sps:$4 sm:$0xff]  }
  0x9b   : > { %1184 = vmatpush1.bf16.msra.mxu1 %v2482_v24 }
  0x9c   : > { %1185 = vmatprep.subr.bf16.mxu1 %v2149_v1 }
  0x9d   : > { %1942 = vmatpush3.bf16.msra.mxu0 %v2372_v6  ;;  %v2095_v6 = vld [vmem:[%s2474_s30 + $0x164] ss:$16 sps:$4 sm:$0xff]  }
  0x9e   : > { %1943 = vmatprep.subr.bf16.mxu0 %v2377_v7  ;;  %v2088_v7 = vld [vmem:[%s2474_s30 + $0x128] ss:$16 sps:$4 sm:$0xff]  }
  0x9f   : > { %1186 = vmatpush1.bf16.msra.mxu1 %v2499_v28 }
  0xa0   : > { %1412 = vmatprep.subr.bf16.mxu1 %v2149_v1  ;;  %1145 = vmatmul.mubr.bf16.gmra.mrb[36].mxu0 %v2085_v62 }
  0xa1   : > { %1944 = vmatpush3.bf16.msra.mxu0 %v2390_v9  ;;  %1152 = vmatprep.mubr.bf16.mxu0 %v2089_v63  ;;  %v2092_v9 = vld [vmem:[%s2474_s30 + $0x14c] ss:$16 sps:$4 sm:$0xff]  }
  0xa2   : > { %1202 = vmatmul.mubr.bf16.vlgmr.msra.gmra.mrb[32].mxu1 %v2080_v0  ;;  %1945 = vmatprep.subr.bf16.mxu0 %v2396_v10  ;;  %v2094_v10 = vld [vmem:[%s2474_s30 + $0x148] ss:$16 sps:$4 sm:$0xff]  }
  0xa3   : > { %1413 = vmatpush1.bf16.msra.mxu1 %v2347_v2  ;;  %1736 = vmatprep.mubr.msk.bf16.mxu1 %vm613_vm0, %v2086_v3  ;;  %v2097_v2 = vld [vmem:[%s2474_s30 + $0x160] ss:$16 sps:$4 sm:$0xff]  }
  0xa4   : > { %1414 = vmatprep.subr.bf16.mxu1 %v2149_v1 }
  0xa5   : > { %1946 = vmatpush3.bf16.msra.mxu0 %v2409_v12  ;;  %v2098_v12 = vld [vmem:[%s2474_s30 + $0x16c] ss:$16 sps:$4 sm:$0xff]  }
  0xa6   : > { %1947 = vmatprep.subr.bf16.mxu0 %v2415_v13  ;;  %v2100_v13 = vld [vmem:[%s2474_s30 + $0x168] ss:$16 sps:$4 sm:$0xff]  }
  0xa7   : > { %1415 = vmatpush1.bf16.msra.mxu1 %v2366_v5  ;;  %v2103_v5 = vld [vmem:[%s2474_s30 + $0x184] ss:$16 sps:$4 sm:$0xff]  }
  0xa8   : > { %1416 = vmatprep.subr.bf16.mxu1 %v2149_v1  ;;  %1153 = vmatmul.mubr.bf16.gmra.mrb[40].mxu0 %v2091_v4 }
  0xa9   : > { %1948 = vmatpush3.bf16.msra.mxu0 %v2428_v15  ;;  %1160 = vmatprep.mubr.bf16.mxu0 %v2095_v6  ;;  %v2106_v15 = vld [vmem:[%s2474_s30 + $0x18c] ss:$16 sps:$4 sm:$0xff]  }
  0xaa   : > { %1210 = vmatmul.mubr.bf16.gmra.mrb[36].mxu1 %v2088_v7  ;;  %1949 = vmatprep.subr.bf16.mxu0 %v2435_v16  ;;  %v2113_v16 = vld [vmem:[%s2474_s30 + $0x1c4] ss:$16 sps:$4 sm:$0xff]  }
  0xab   : > { %1417 = vmatpush1.bf16.msra.mxu1 %v2383_v8  ;;  %1737 = vmatprep.mubr.msk.bf16.mxu1 %vm613_vm0, %v2092_v9  ;;  %v2101_v8 = vld [vmem:[%s2474_s30 + $0x180] ss:$16 sps:$4 sm:$0xff]  }
  0xac   : > { %1418 = vmatprep.subr.bf16.mxu1 %v2149_v1 }
  0xad   : > { %1950 = vmatpush3.bf16.msra.mxu0 %v2448_v18  ;;  %v2110_v18 = vld [vmem:[%s2474_s30 + $0x1ac] ss:$16 sps:$4 sm:$0xff]  }
  0xae   : > { %1951 = vmatprep.subr.bf16.mxu0 %v2454_v19  ;;  %v2115_v19 = vld [vmem:[%s2474_s30 + $0x1c0] ss:$16 sps:$4 sm:$0xff]  }
  0xaf   : > { %1419 = vmatpush1.bf16.msra.mxu1 %v2402_v11  ;;  %v2107_v11 = vld [vmem:[%s2474_s30 + $0x1a4] ss:$16 sps:$4 sm:$0xff]  }
  0xb0   : > { %1420 = vmatprep.subr.bf16.mxu1 %v2149_v1  ;;  %1161 = vmatmul.mubr.bf16.gmra.mrb[44].mxu0 %v2097_v2 }
  0xb1   : > { %1952 = vmatpush3.bf16.msra.mxu0 %v2465_v21  ;;  %1379 = vmatprep.mubr.bf16.mxu0 %v2103_v5  ;;  %v2112_v21 = vld [vmem:[%s2474_s30 + $0x1a8] ss:$16 sps:$4 sm:$0xff]  }
  0xb2   : > { %1218 = vmatmul.mubr.bf16.gmra.mrb[40].mxu1 %v2094_v10  ;;  %1953 = vmatprep.subr.bf16.mxu0 %v2472_v22  ;;  %v2116_v22 = vld [vmem:[%s2474_s30 + $0x1cc] ss:$16 sps:$4 sm:$0xff]  }
  0xb3   : > { %1421 = vmatpush1.bf16.msra.mxu1 %v2421_v14  ;;  %1738 = vmatprep.mubr.msk.bf16.mxu1 %vm613_vm0, %v2098_v12  ;;  %v2109_v14 = vld [vmem:[%s2474_s30 + $0x1a0] ss:$16 sps:$4 sm:$0xff]  }
  0xb4   : > { %1422 = vmatprep.subr.bf16.mxu1 %v2149_v1 }
  0xb5   : > { %1954 = vmatpush3.bf16.msra.mxu0 %v2490_v26 }
  0xb7   : > { %1423 = vmatpush1.bf16.msra.mxu1 %v2441_v17  ;;  %v2104_v17 = vld [vmem:[%s2474_s30 + $0x188] ss:$16 sps:$4 sm:$0xff]  }
  0xb8   : > { %1424 = vmatprep.subr.bf16.mxu1 %v2149_v1  ;;  %1380 = vmatmul.mubr.bf16.vlgmr.msra.gmra.mrb[48].mxu0 %v2101_v8 }
  0xb9   : > { %1387 = vmatprep.mubr.bf16.mxu0 %v2107_v11 }
  0xba   : > { %1226 = vmatmul.mubr.bf16.gmra.mrb[44].mxu1 %v2100_v13 }
  0xbb   : > { %1425 = vmatpush1.bf16.msra.mxu1 %v2459_v20  ;;  %1771 = vmatprep.mubr.msk.bf16.mxu1 %vm613_vm0, %v2106_v15  ;;  %v2119_v20 = vld [vmem:[%s2474_s30 + $0x1e4] ss:$16 sps:$4 sm:$0xff]  }
  0xbc   : > { %1426 = vmatprep.subr.bf16.mxu1 %v2149_v1 }
  0xbf   : > { %1427 = vmatpush1.bf16.msra.mxu1 %v2482_v24  ;;  %v2122_v24 = vld [vmem:[%s2474_s30 + $0x1ec] ss:$16 sps:$4 sm:$0xff]  }
  0xc0   : > { %1428 = vmatprep.subr.bf16.mxu1 %v2149_v1  ;;  %1388 = vmatmul.mubr.bf16.gmra.mrb[52].mxu0 %v2109_v14  ;;  %v2118_v1 = vld [vmem:[%s2474_s30 + $0x1c8] ss:$16 sps:$4 sm:$0xff]  }
  0xc1   : > { %1395 = vmatprep.mubr.bf16.mxu0 %v2113_v16 }
  0xc3   : > { %1429 = vmatpush1.bf16.msra.mxu1 %v2499_v28 }
  0xc6   : > { %1445 = vmatmul.mubr.bf16.vlgmr.msra.gmra.mrb[48].mxu1 %v2104_v17 }
  0xc7   : > { %1772 = vmatprep.mubr.msk.bf16.mxu1 %vm613_vm0, %v2110_v18 }
  0xc8   : > { %1396 = vmatmul.mubr.bf16.gmra.mrb[56].mxu0 %v2115_v19 }
  0xc9   : > { %1403 = vmatprep.mubr.bf16.mxu0 %v2119_v20 }
  0xce   : > { %1453 = vmatmul.mubr.bf16.gmra.mrb[52].mxu1 %v2112_v21 }
  0xcf   : > { %1773 = vmatprep.mubr.msk.bf16.mxu1 %vm613_vm0, %v2116_v22 }
  0xd0   : > { %1404 = vmatmul.mubr.bf16.gmra.mrb[60].mxu0 %v2121_v23 }
  0xd6   : > { %1461 = vmatmul.mubr.bf16.gmra.mrb[56].mxu1 %v2118_v1 }
  0xd7   : > { %1774 = vmatprep.mubr.msk.bf16.mxu1 %vm613_vm0, %v2122_v24 }
  0xde   : > { %1469 = vmatmul.mubr.bf16.gmra.mrb[60].mxu1 %v2124_v25 }
 0x12a   : > { %v1835_v26 = vpop.f32.mrb[0].mxu0 }
 0x12b   : > { %v1836_v27 = vpop.f32.mrb[1].mxu0 }
 0x12c   : > { %v1837_v28 = vadd.f32 %v1836_v27, %v1835_v26  ;;  %v1838_v29 = vpop.f32.mrb[2].mxu0 }
 0x12d   : > { %v1839_v30 = vpop.f32.mrb[3].mxu0  ;;  %v725_v31 = vpop.f32.mrb[0].mxu1 }
 0x12e   : > { %v1840_v32 = vadd.f32 %v1839_v30, %v1838_v29  ;;  %v2682_v33 = vadd.f32 %v1837_v28, %v725_v31  ;;  %v727_v34 = vpop.f32.mrb[1].mxu1 }
 0x12f   : > { %v728_v35 = vpop.f32.mrb[2].mxu1 }
 0x130   : > { %v2684_v36 = vadd.f32 %v1840_v32, %v728_v35  ;;  %v730_v37 = vpop.f32.mrb[3].mxu1 }
 0x132   : > { %v1841_v38 = vpop.f32.mrb[4].mxu0 }
 0x133   : > { %v1842_v39 = vpop.f32.mrb[5].mxu0 }
 0x134   : > { %v1843_v40 = vadd.f32 %v1842_v39, %v1841_v38  ;;  %v1844_v41 = vpop.f32.mrb[6].mxu0 }
 0x135   : > { %v733_v42 = vpop.f32.mrb[4].mxu1  ;;  %v1845_v43 = vpop.f32.mrb[7].mxu0 }
 0x136   : > { %v2686_v44 = vadd.f32 %v1843_v40, %v733_v42  ;;  %v1846_v45 = vadd.f32 %v1845_v43, %v1844_v41  ;;  %v735_v46 = vpop.f32.mrb[5].mxu1 }
 0x137   : > { %v736_v47 = vpop.f32.mrb[6].mxu1 }
 0x138   : > { %v2688_v48 = vadd.f32 %v1846_v45, %v736_v47  ;;  %v738_v49 = vpop.f32.mrb[7].mxu1 }
 0x13a   : > { %v1847_v50 = vpop.f32.mrb[8].mxu0 }
 0x13b   : > { %v1848_v51 = vpop.f32.mrb[9].mxu0 }
 0x13c   : > { %v1849_v52 = vadd.f32 %v1848_v51, %v1847_v50  ;;  %v1850_v53 = vpop.f32.mrb[10].mxu0 }
 0x13d   : > { %v741_v54 = vpop.f32.mrb[8].mxu1  ;;  %v1851_v55 = vpop.f32.mrb[11].mxu0 }
 0x13e   : > { %v2690_v56 = vadd.f32 %v1849_v52, %v741_v54  ;;  %v1852_v57 = vadd.f32 %v1851_v55, %v1850_v53  ;;  %v743_v58 = vpop.f32.mrb[9].mxu1 }
 0x13f   : > { %v744_v59 = vpop.f32.mrb[10].mxu1 }
 0x140   : > { %v2692_v60 = vadd.f32 %v1852_v57, %v744_v59  ;;  %v746_v61 = vpop.f32.mrb[11].mxu1 }
 0x142   : > { %v1853_v62 = vpop.f32.mrb[12].mxu0 }
 0x143   : > { %v1854_v63 = vpop.f32.mrb[13].mxu0 }
 0x144   : > { %v1855_v0 = vadd.f32 %v1854_v63, %v1853_v62  ;;  %v1856_v3 = vpop.f32.mrb[14].mxu0 }
 0x145   : > { %v749_v4 = vpop.f32.mrb[12].mxu1  ;;  %v1857_v6 = vpop.f32.mrb[15].mxu0 }
 0x146   : > { %v2694_v7 = vadd.f32 %v1855_v0, %v749_v4  ;;  %v1858_v9 = vadd.f32 %v1857_v6, %v1856_v3  ;;  %v751_v2 = vpop.f32.mrb[13].mxu1 }
 0x147   : > { %v752_v5 = vpop.f32.mrb[14].mxu1 }
 0x148   : > { %v2696_v10 = vadd.f32 %v1858_v9, %v752_v5  ;;  %v754_v12 = vpop.f32.mrb[15].mxu1 }
 0x14a   : > { %v1875_v8 = vpop.f32.mrb[16].mxu0 }
 0x14b   : > { %v1876_v11 = vpop.f32.mrb[17].mxu0 }
 0x14c   : > { %v1877_v13 = vadd.f32 %v1876_v11, %v1875_v8  ;;  %v1878_v15 = vpop.f32.mrb[18].mxu0 }
 0x14d   : > { %v1879_v14 = vpop.f32.mrb[19].mxu0 }
 0x14e   : > { %v1880_v16 = vadd.f32 %v1879_v14, %v1878_v15 }
 0x151   : > { %v960_v17 = vpop.f32.mrb[16].mxu1 }
 0x152   : > { %v2698_v18 = vadd.f32 %v1877_v13, %v960_v17  ;;  %v962_v19 = vpop.f32.mrb[17].mxu1  ;;  %v1881_v20 = vpop.f32.mrb[20].mxu0 }
 0x153   : > { %v963_v21 = vpop.f32.mrb[18].mxu1  ;;  %v1882_v22 = vpop.f32.mrb[21].mxu0 }
 0x154   : > { %v991_v23 = vmax.f32 %v2682_v33, %v2698_v18  ;;  %v2702_v1 = vadd.f32 %v1880_v16, %v963_v21  ;;  %v965_v24 = vpop.f32.mrb[19].mxu1  ;;  %v1883_v25 = vadd.f32 %v1882_v22, %v1881_v20  ;;  %v1884_v26 = vpop.f32.mrb[22].mxu0 }
 0x155   : > { %v1885_v27 = vpop.f32.mrb[23].mxu0 }
 0x156   : > { %v992_v28 = vmax.f32 %v2684_v36, %v2702_v1  ;;  %v1886_v29 = vadd.f32 %v1885_v27, %v1884_v26 }
 0x159   : > { %v968_v30 = vpop.f32.mrb[20].mxu1 }
 0x15a   : > { %v2706_v31 = vadd.f32 %v1883_v25, %v968_v30  ;;  %v970_v32 = vpop.f32.mrb[21].mxu1  ;;  %v1887_v34 = vpop.f32.mrb[24].mxu0 }
 0x15b   : > { %v971_v35 = vpop.f32.mrb[22].mxu1  ;;  %v1888_v37 = vpop.f32.mrb[25].mxu0 }
 0x15c   : > { %v993_v33 = vmax.f32 %v2686_v44, %v2706_v31  ;;  %v2710_v38 = vadd.f32 %v1886_v29, %v971_v35  ;;  %v973_v39 = vpop.f32.mrb[23].mxu1  ;;  %v1889_v40 = vadd.f32 %v1888_v37, %v1887_v34  ;;  %v1890_v41 = vpop.f32.mrb[26].mxu0 }
 0x15d   : > { %v1891_v42 = vpop.f32.mrb[27].mxu0 }
 0x15e   : > { %v994_v36 = vmax.f32 %v2688_v48, %v2710_v38  ;;  %v1892_v43 = vadd.f32 %v1891_v42, %v1890_v41 }
 0x161   : > { %v976_v45 = vpop.f32.mrb[24].mxu1 }
 0x162   : > { %v2714_v46 = vadd.f32 %v1889_v40, %v976_v45  ;;  %v978_v47 = vpop.f32.mrb[25].mxu1  ;;  %v1893_v49 = vpop.f32.mrb[28].mxu0 }
 0x163   : > { %v979_v50 = vpop.f32.mrb[26].mxu1  ;;  %v1894_v51 = vpop.f32.mrb[29].mxu0 }
 0x164   : > { %v995_v44 = vmax.f32 %v2690_v56, %v2714_v46  ;;  %v2718_v52 = vadd.f32 %v1892_v43, %v979_v50  ;;  %v981_v53 = vpop.f32.mrb[27].mxu1  ;;  %v1895_v54 = vadd.f32 %v1894_v51, %v1893_v49  ;;  %v1896_v55 = vpop.f32.mrb[30].mxu0 }
 0x165   : > { %v1897_v57 = vpop.f32.mrb[31].mxu0 }
 0x166   : > { %v996_v48 = vmax.f32 %v2692_v60, %v2718_v52  ;;  %v1898_v58 = vadd.f32 %v1897_v57, %v1896_v55 }
 0x169   : > { %v984_v59 = vpop.f32.mrb[28].mxu1 }
 0x16a   : > { %v2722_v61 = vadd.f32 %v1895_v54, %v984_v59  ;;  %v986_v62 = vpop.f32.mrb[29].mxu1 }
 0x16b   : > { %v987_v63 = vpop.f32.mrb[30].mxu1  ;;  %v1915_v0 = vpop.f32.mrb[32].mxu0 }
 0x16c   : > { %v997_v3 = vmax.f32 %v2694_v7, %v2722_v61  ;;  %v2726_v56 = vadd.f32 %v1898_v58, %v987_v63  ;;  %v989_v4 = vpop.f32.mrb[31].mxu1  ;;  %v1916_v6 = vpop.f32.mrb[33].mxu0 }
 0x16d   : > { %v1917_v9 = vadd.f32 %v1916_v6, %v1915_v0  ;;  %v1918_v2 = vpop.f32.mrb[34].mxu0 }
 0x16e   : > { %v998_v5 = vmax.f32 %v2696_v10, %v2726_v56  ;;  %v1919_v60 = vpop.f32.mrb[35].mxu0 }
 0x16f   : > { %v1920_v12 = vadd.f32 %v1919_v60, %v1918_v2 }
 0x173   : > { %v1921_v8 = vpop.f32.mrb[36].mxu0 }
 0x174   : > { %v1922_v11 = vpop.f32.mrb[37].mxu0 }
 0x175   : > { %v1203_v13 = vpop.f32.mrb[32].mxu1  ;;  %v1923_v15 = vadd.f32 %v1922_v11, %v1921_v8  ;;  %v1924_v14 = vpop.f32.mrb[38].mxu0 }
 0x176   : > { %v1204_v16 = vadd.f32 %v1917_v9, %v1203_v13  ;;  %v1205_v17 = vpop.f32.mrb[33].mxu1  ;;  %v1925_v18 = vpop.f32.mrb[39].mxu0 }
 0x177   : > { %v1206_v7 = vpop.f32.mrb[34].mxu1  ;;  %v1926_v19 = vadd.f32 %v1925_v18, %v1924_v14 }
 0x178   : > { %v2730_v20 = vmax.f32 %v991_v23, %v1204_v16  ;;  %v1207_v21 = vadd.f32 %v1920_v12, %v1206_v7  ;;  %v1208_v22 = vpop.f32.mrb[35].mxu1 }
 0x17a   : > { %v2732_v1 = vmax.f32 %v992_v28, %v1207_v21 }
 0x17b   : > { %v1927_v24 = vpop.f32.mrb[40].mxu0 }
 0x17c   : > { %v1928_v10 = vpop.f32.mrb[41].mxu0 }
 0x17d   : > { %v1211_v25 = vpop.f32.mrb[36].mxu1  ;;  %v1929_v26 = vadd.f32 %v1928_v10, %v1927_v24  ;;  %v1930_v27 = vpop.f32.mrb[42].mxu0 }
 0x17e   : > { %v1212_v29 = vadd.f32 %v1923_v15, %v1211_v25  ;;  %v1213_v30 = vpop.f32.mrb[37].mxu1  ;;  %v1931_v31 = vpop.f32.mrb[43].mxu0 }
 0x17f   : > { %v1214_v32 = vpop.f32.mrb[38].mxu1  ;;  %v1932_v34 = vadd.f32 %v1931_v31, %v1930_v27 }
 0x180   : > { %v2734_v35 = vmax.f32 %v993_v33, %v1212_v29  ;;  %v1215_v37 = vadd.f32 %v1926_v19, %v1214_v32  ;;  %v1216_v38 = vpop.f32.mrb[39].mxu1 }
 0x182   : > { %v2736_v23 = vmax.f32 %v994_v36, %v1215_v37 }
 0x183   : > { %v1933_v39 = vpop.f32.mrb[44].mxu0 }
 0x184   : > { %v1934_v40 = vpop.f32.mrb[45].mxu0 }
 0x185   : > { %v1219_v28 = vpop.f32.mrb[40].mxu1  ;;  %v1935_v41 = vadd.f32 %v1934_v40, %v1933_v39  ;;  %v1936_v42 = vpop.f32.mrb[46].mxu0 }
 0x186   : > { %v1220_v43 = vadd.f32 %v1929_v26, %v1219_v28  ;;  %v1221_v45 = vpop.f32.mrb[41].mxu1  ;;  %v1937_v46 = vpop.f32.mrb[47].mxu0 }
 0x187   : > { %v1222_v47 = vpop.f32.mrb[42].mxu1  ;;  %v1938_v49 = vadd.f32 %v1937_v46, %v1936_v42 }
 0x188   : > { %v2738_v50 = vmax.f32 %v995_v44, %v1220_v43  ;;  %v1223_v51 = vadd.f32 %v1932_v34, %v1222_v47  ;;  %v1224_v52 = vpop.f32.mrb[43].mxu1 }
 0x18a   : > { %v2740_v33 = vmax.f32 %v996_v48, %v1223_v51 }
 0x18b   : > { %v1955_v53 = vpop.f32.mrb[48].mxu0 }
 0x18c   : > { %v1956_v36 = vpop.f32.mrb[49].mxu0 }
 0x18d   : > { %v1227_v54 = vpop.f32.mrb[44].mxu1  ;;  %v1957_v55 = vadd.f32 %v1956_v36, %v1955_v53  ;;  %v1958_v57 = vpop.f32.mrb[50].mxu0 }
 0x18e   : > { %v1228_v58 = vadd.f32 %v1935_v41, %v1227_v54  ;;  %v1229_v59 = vpop.f32.mrb[45].mxu1  ;;  %v1959_v61 = vpop.f32.mrb[51].mxu0 }
 0x18f   : > { %v1230_v62 = vpop.f32.mrb[46].mxu1  ;;  %v1960_v63 = vadd.f32 %v1959_v61, %v1958_v57 }
 0x190   : > { %v2742_v0 = vmax.f32 %v997_v3, %v1228_v58  ;;  %v1231_v56 = vadd.f32 %v1938_v49, %v1230_v62  ;;  %v1232_v44 = vpop.f32.mrb[47].mxu1  ;;  %v2751_v3 = vld [vmem:[%s2790_s2] ss:$0 sm:$0xff] }
 0x192   : > { %v2744_v4 = vmax.f32 %v998_v5, %v1231_v56 }
 0x193   : > { %v1961_v6 = vpop.f32.mrb[52].mxu0 }
 0x194   : > { %v1962_v48 = vpop.f32.mrb[53].mxu0 }
 0x195   : > { %v1963_v9 = vadd.f32 %v1962_v48, %v1961_v6  ;;  %v1964_v2 = vpop.f32.mrb[54].mxu0 }
 0x196   : > { %v1965_v60 = vpop.f32.mrb[55].mxu0 }
 0x197   : > { %v1966_v12 = vadd.f32 %v1965_v60, %v1964_v2 }
 0x199   : > { %v1446_v8 = vpop.f32.mrb[48].mxu1 }
 0x19a   : > { %v1447_v11 = vadd.f32 %v1957_v55, %v1446_v8  ;;  %v1448_v13 = vpop.f32.mrb[49].mxu1 }
 0x19b   : > { %v1449_v15 = vpop.f32.mrb[50].mxu1  ;;  %v1967_v5 = vpop.f32.mrb[56].mxu0 }
 0x19c   : > { %v1477_v14 = vmax.f32 %v2730_v20, %v1447_v11  ;;  %v1450_v16 = vadd.f32 %v1960_v63, %v1449_v15  ;;  %v1451_v17 = vpop.f32.mrb[51].mxu1  ;;  %v1968_v18 = vpop.f32.mrb[57].mxu0 }
 0x19d   : > { %v1969_v7 = vadd.f32 %v1968_v18, %v1967_v5  ;;  %v1970_v19 = vpop.f32.mrb[58].mxu0 }
 0x19e   : > { %v1492_v21 = vadd.f32 %v2751_v3, %v1477_v14  ;;  %v1478_v22 = vmax.f32 %v2732_v1, %v1450_v16  ;;  %v1971_v24 = vpop.f32.mrb[59].mxu0 }
 0x19f   : > { %v1972_v10 = vadd.f32 %v1971_v24, %v1970_v19 }
 0x1a0   : > { %v1493_v25 = vadd.f32 %v2751_v3, %v1478_v22  ;;  %v1500_v27 = vmax.f32 %v1492_v21, 0.0 }
 0x1a1   : > { %v1454_v26 = vpop.f32.mrb[52].mxu1 }
 0x1a2   : > { %v1501_v29 = vmax.f32 %v1493_v25, 0.0  ;;  %v1455_v30 = vadd.f32 %v1963_v9, %v1454_v26  ;;  %v1456_v20 = vpop.f32.mrb[53].mxu1 }
 0x1a3   : > { %v1457_v31 = vpop.f32.mrb[54].mxu1  ;;  %v1973_v32 = vpop.f32.mrb[60].mxu0 }
 0x1a4   : > { %v1799_v34 = vpack.c.bf16 %v1501_v29, %v1500_v27  ;;  %v1479_v1 = vmax.f32 %v2734_v35, %v1455_v30  ;;  %v1458_v37 = vadd.f32 %v1966_v12, %v1457_v31  ;;  %v1459_v38 = vpop.f32.mrb[55].mxu1  ;;  %v1974_v39 = vpop.f32.mrb[61].mxu0 }
 0x1a5   : > { %v1975_v40 = vadd.f32 %v1974_v39, %v1973_v32  ;;  %v1976_v28 = vpop.f32.mrb[62].mxu0 }
 0x1a6   : > { %1800 = vst [vmem:[%s2760_s20] sm:$0xff] %v1799_v34   ;;  %v1494_v41 = vadd.f32 %v2751_v3, %v1479_v1  ;;  %v1480_v42 = vmax.f32 %v2736_v23, %v1458_v37  ;;  %v1977_v43 = vpop.f32.mrb[63].mxu0 }
 0x1a7   : > { %v1978_v45 = vadd.f32 %v1977_v43, %v1976_v28 }
 0x1a8   : > { %v1495_v46 = vadd.f32 %v2751_v3, %v1480_v42  ;;  %v1502_v49 = vmax.f32 %v1494_v41, 0.0 }
 0x1a9   : > { %v1462_v47 = vpop.f32.mrb[56].mxu1 }
 0x1aa   : > { %v1503_v51 = vmax.f32 %v1495_v46, 0.0  ;;  %v1463_v52 = vadd.f32 %v1969_v7, %v1462_v47  ;;  %v1464_v35 = vpop.f32.mrb[57].mxu1 }
 0x1ab   : > { %v1465_v53 = vpop.f32.mrb[58].mxu1 }
 0x1ac   : > { %v1804_v36 = vpack.c.bf16 %v1503_v51, %v1502_v49  ;;  %v1481_v54 = vmax.f32 %v2738_v50, %v1463_v52  ;;  %v1466_v55 = vadd.f32 %v1972_v10, %v1465_v53  ;;  %v1467_v57 = vpop.f32.mrb[59].mxu1 }
 0x1ae   : > { %1816 = vst [vmem:[%s2760_s20 + $0x8] sm:$0xff] %v1804_v36   ;;  %v1496_v58 = vadd.f32 %v2751_v3, %v1481_v54  ;;  %v1482_v23 = vmax.f32 %v2740_v33, %v1466_v55 }
 0x1b0   : > { %v1497_v59 = vadd.f32 %v2751_v3, %v1482_v23  ;;  %v1504_v62 = vmax.f32 %v1496_v58, 0.0 }
 0x1b1   : > { %v1470_v61 = vpop.f32.mrb[60].mxu1 }
 0x1b2   : > { %v1505_v63 = vmax.f32 %v1497_v59, 0.0  ;;  %v1471_v56 = vadd.f32 %v1975_v40, %v1470_v61  ;;  %v1472_v44 = vpop.f32.mrb[61].mxu1 }
 0x1b3   : > { %v1473_v6 = vpop.f32.mrb[62].mxu1 }
 0x1b4   : > { %v1809_v48 = vpack.c.bf16 %v1505_v63, %v1504_v62  ;;  %v1483_v50 = vmax.f32 %v2742_v0, %v1471_v56  ;;  %v1474_v9 = vadd.f32 %v1978_v45, %v1473_v6  ;;  %v1475_v2 = vpop.f32.mrb[63].mxu1 }
 0x1b6   : > { %1817 = vst [vmem:[%s2760_s20 + $0x10] sm:$0xff] %v1809_v48   ;;  %v1498_v60 = vadd.f32 %v2751_v3, %v1483_v50  ;;  %v1484_v12 = vmax.f32 %v2744_v4, %v1474_v9 }
 0x1b8   : > { %v1499_v33 = vadd.f32 %v2751_v3, %v1484_v12  ;;  %v1506_v8 = vmax.f32 %v1498_v60, 0.0 }
 0x1ba   : > { %v1507_v11 = vmax.f32 %v1499_v33, 0.0 }
 0x1bc   : > { %v1814_v13 = vpack.c.bf16 %v1507_v11, %v1506_v8 }
 0x1be   : > { %1818 = vst [vmem:[%s2760_s20 + $0x18] sm:$0xff] %v1814_v13  }
 0x1bf PF: > { %p10_p9 = scmp.ge.s32.totalorder %s2187_s16, 4   ;;  %s2792_s12 = smov %s2143_s13 }
 0x1c0   : > { %s2793_s13 = smov %s2196_s19  ;;  %s2794_s14 = smov %s2187_s16 }
 0x1c1   :  { %12 = sbr.rel (!%p10_p9) target bundleno = 2 (0x2), region = 93 }

// kernel: cnn_forward.5
= control target key start
LH: loop header
LB: loop body
LE: loop exit
PB: predicated region body
PF: predicated region fallthrough
CT: control target
= control target key end

     0   :  { %vm1558_vm0 = vmmov 0   ;;  %vm885_vm1 = vcmask 261120   ;;  %s1921_s1 = inlined_call_operand.vmem [shape: bf16[1568,128], index: 1, kind: input, shape index: {}]   ;;  %s1922_s0 = inlined_call_operand.vmem [shape: bf16[1,16,1568], index: 0, kind: input, shape index: {}]   ;;  %s1923_s2 = inlined_call_operand.vmem [shape: f32[1,128], index: 2, kind: input, shape index: {}]   ;;  %s1924_s3 = inlined_call_operand.vmem [shape: f32[16,128], index: 3, kind: output, shape index: {}]  }
   0x1   :  { %v1440_v0 = vld [vmem:[%s1921_s1 + $0x40] sm:$0xff]   ;;  %v1444_v4 = vld [vmem:[%s1921_s1 + $0x48] sm:$0xff]   ;;  %v1448_v8 = vld [vmem:[%s1921_s1 + $0x50] sm:$0xff]  }
   0x2   :  { %v1441_v1 = vld [vmem:[%s1921_s1] sm:$0xff]   ;;  %1295 = vmatprep.subr.bf16.mxu0 %v1440_v0  ;;  %v1445_v5 = vld [vmem:[%s1921_s1 + $0x8] sm:$0xff]   ;;  %v1449_v9 = vld [vmem:[%s1921_s1 + $0x10] sm:$0xff]  }
   0x3   :  { %v1442_v2 = vld [vmem:[%s1921_s1 + $0xc0] sm:$0xff]   ;;  %1296 = vmatpush3.bf16.msra.mxu0 %v1441_v1  ;;  %v1446_v6 = vld [vmem:[%s1921_s1 + $0xc8] sm:$0xff]   ;;  %v1450_v10 = vld [vmem:[%s1921_s1 + $0xd0] sm:$0xff]  }
   0x4   :  { %v1443_v3 = vld [vmem:[%s1921_s1 + $0x80] sm:$0xff]   ;;  %1317 = vmatprep.subr.bf16.mxu1 %v1442_v2  ;;  %1297 = vmatprep.subr.bf16.mxu0 %v1444_v4  ;;  %v1447_v7 = vld [vmem:[%s1921_s1 + $0x88] sm:$0xff]   ;;  %v1451_v11 = vld [vmem:[%s1921_s1 + $0x90] sm:$0xff]  }
   0x5   :  { %1318 = vmatpush3.bf16.msra.mxu1 %v1443_v3  ;;  %v1452_v12 = vld [vmem:[%s1921_s1 + $0x58] sm:$0xff]   ;;  %v1456_v16 = vld [vmem:[%s1921_s1 + $0x60] sm:$0xff]   ;;  %v1460_v20 = vld [vmem:[%s1921_s1 + $0x68] sm:$0xff]  }
   0x6   :  { %1319 = vmatprep.subr.bf16.mxu1 %v1446_v6  ;;  %v1453_v13 = vld [vmem:[%s1921_s1 + $0x18] sm:$0xff]   ;;  %v1457_v17 = vld [vmem:[%s1921_s1 + $0x20] sm:$0xff]   ;;  %v1461_v21 = vld [vmem:[%s1921_s1 + $0x28] sm:$0xff]  }
   0x7   :  { %1298 = vmatpush3.bf16.msra.mxu0 %v1445_v5  ;;  %v1454_v14 = vld [vmem:[%s1921_s1 + $0xd8] sm:$0xff]   ;;  %v1458_v18 = vld [vmem:[%s1921_s1 + $0xe0] sm:$0xff]   ;;  %v1462_v22 = vld [vmem:[%s1921_s1 + $0xe8] sm:$0xff]  }
   0x8   :  { %1299 = vmatprep.subr.bf16.mxu0 %v1448_v8  ;;  %v1455_v15 = vld [vmem:[%s1921_s1 + $0x98] sm:$0xff]   ;;  %v1459_v19 = vld [vmem:[%s1921_s1 + $0xa0] sm:$0xff]   ;;  %v1463_v23 = vld [vmem:[%s1921_s1 + $0xa8] sm:$0xff]  }
   0x9   :  { %1320 = vmatpush3.bf16.msra.mxu1 %v1447_v7  ;;  %v1464_v24 = vld [vmem:[%s1921_s1 + $0x70] sm:$0xff]   ;;  %v1468_v28 = vld [vmem:[%s1921_s1 + $0x78] sm:$0xff]   ;;  %v1475_v34 = vld [vmem:[%s1921_s1 + $0x140] sm:$0xff]  }
   0xa   :  { %1321 = vmatprep.subr.bf16.mxu1 %v1450_v10  ;;  %v1465_v25 = vld [vmem:[%s1921_s1 + $0x30] sm:$0xff]   ;;  %v1469_v29 = vld [vmem:[%s1921_s1 + $0x38] sm:$0xff]   ;;  %v1478_v36 = vld [vmem:[%s1922_s0 + $0xc] ss:$52 sps:$4 sm:$0xff]  }
   0xb   :  { %1300 = vmatpush3.bf16.msra.mxu0 %v1449_v9  ;;  %v1466_v26 = vld [vmem:[%s1921_s1 + $0xf0] sm:$0xff]   ;;  %v1470_v30 = vld [vmem:[%s1921_s1 + $0xf8] sm:$0xff]   ;;  %v1479_v37 = vld [vmem:[%s1921_s1 + $0x100] sm:$0xff]   ;;  %962 = vmatprep.mubr.bf16.mxu1 %v1478_v36 }
   0xc   :  { %1301 = vmatprep.subr.bf16.mxu0 %v1452_v12  ;;  %v1467_v27 = vld [vmem:[%s1921_s1 + $0xb0] sm:$0xff]   ;;  %v1471_v31 = vld [vmem:[%s1921_s1 + $0xb8] sm:$0xff]   ;;  %v1480_v38 = vld [vmem:[%s1921_s1 + $0x1c0] sm:$0xff]  }
   0xd   :  { %1322 = vmatpush3.bf16.msra.mxu1 %v1451_v11  ;;  %v1472_v32 = vld [vmem:[%s1922_s0] ss:$52 sps:$4 sm:$0xff]   ;;  %v1474_v33 = vld [vmem:[%s1922_s0 + $0x4] ss:$52 sps:$4 sm:$0xff]   ;;  %v1476_v35 = vld [vmem:[%s1922_s0 + $0x8] ss:$52 sps:$4 sm:$0xff]  }
   0xe   :  { %1323 = vmatprep.subr.bf16.mxu1 %v1454_v14  ;;  %921 = vmatprep.mubr.bf16.mxu0 %v1474_v33  ;;  %v1481_v39 = vld [vmem:[%s1921_s1 + $0x180] sm:$0xff]   ;;  %v1482_v40 = vld [vmem:[%s1921_s1 + $0x148] sm:$0xff]   ;;  %v1486_v44 = vld [vmem:[%s1921_s1 + $0x150] sm:$0xff]  }
   0xf   :  { %1302 = vmatpush3.bf16.msra.mxu0 %v1453_v13  ;;  %v1483_v41 = vld [vmem:[%s1921_s1 + $0x108] sm:$0xff]   ;;  %v1487_v45 = vld [vmem:[%s1921_s1 + $0x110] sm:$0xff]   ;;  %v1490_v48 = vld [vmem:[%s1921_s1 + $0x158] sm:$0xff]  }
  0x10   :  { %1303 = vmatprep.subr.bf16.mxu0 %v1456_v16  ;;  %v1484_v42 = vld [vmem:[%s1921_s1 + $0x1c8] sm:$0xff]   ;;  %v1488_v46 = vld [vmem:[%s1921_s1 + $0x1d0] sm:$0xff]   ;;  %v1491_v49 = vld [vmem:[%s1921_s1 + $0x118] sm:$0xff]  }
  0x11   :  { %1324 = vmatpush3.bf16.msra.mxu1 %v1455_v15  ;;  %v1485_v43 = vld [vmem:[%s1921_s1 + $0x188] sm:$0xff]   ;;  %v1489_v47 = vld [vmem:[%s1921_s1 + $0x190] sm:$0xff]   ;;  %v1492_v50 = vld [vmem:[%s1921_s1 + $0x1d8] sm:$0xff]  }
  0x12   :  { %1325 = vmatprep.subr.bf16.mxu1 %v1458_v18  ;;  %v1493_v51 = vld [vmem:[%s1921_s1 + $0x198] sm:$0xff]   ;;  %v1494_v52 = vld [vmem:[%s1921_s1 + $0x160] sm:$0xff]   ;;  %v1498_v56 = vld [vmem:[%s1921_s1 + $0x168] sm:$0xff]  }
  0x13   :  { %1304 = vmatpush3.bf16.msra.mxu0 %v1457_v17  ;;  %v1495_v53 = vld [vmem:[%s1921_s1 + $0x120] sm:$0xff]   ;;  %v1499_v57 = vld [vmem:[%s1921_s1 + $0x128] sm:$0xff]   ;;  %v1502_v60 = vld [vmem:[%s1921_s1 + $0x170] sm:$0xff]  }
  0x14   :  { %1305 = vmatprep.subr.bf16.mxu0 %v1460_v20  ;;  %v1496_v54 = vld [vmem:[%s1921_s1 + $0x1e0] sm:$0xff]   ;;  %v1500_v58 = vld [vmem:[%s1921_s1 + $0x1e8] sm:$0xff]   ;;  %v1503_v61 = vld [vmem:[%s1921_s1 + $0x130] sm:$0xff]  }
  0x15   :  { %1326 = vmatpush3.bf16.msra.mxu1 %v1459_v19  ;;  %v1497_v55 = vld [vmem:[%s1921_s1 + $0x1a0] sm:$0xff]   ;;  %v1501_v59 = vld [vmem:[%s1921_s1 + $0x1a8] sm:$0xff]   ;;  %v1504_v62 = vld [vmem:[%s1921_s1 + $0x1f0] sm:$0xff]  }
  0x16   :  { %1327 = vmatprep.subr.bf16.mxu1 %v1462_v22  ;;  %v1505_v63 = vld [vmem:[%s1921_s1 + $0x1b0] sm:$0xff]   ;;  %v1506_v0 = vld [vmem:[%s1921_s1 + $0x178] sm:$0xff]   ;;  %v1513_v6 = vld [vmem:[%s1921_s1 + $0x240] sm:$0xff]  }
  0x17   :  { %1306 = vmatpush3.bf16.msra.mxu0 %v1461_v21  ;;  %v1507_v1 = vld [vmem:[%s1921_s1 + $0x138] sm:$0xff]   ;;  %v1510_v4 = vld [vmem:[%s1922_s0 + $0x10] ss:$52 sps:$4 sm:$0xff]   ;;  %v1512_v5 = vld [vmem:[%s1922_s0 + $0x14] ss:$52 sps:$4 sm:$0xff]  }
  0x18   :  { %1307 = vmatprep.subr.bf16.mxu0 %v1464_v24  ;;  %v1508_v2 = vld [vmem:[%s1921_s1 + $0x1f8] sm:$0xff]   ;;  %v1517_v9 = vld [vmem:[%s1921_s1 + $0x200] sm:$0xff]   ;;  %v1520_v12 = vld [vmem:[%s1921_s1 + $0x248] sm:$0xff]  }
  0x19   :  { %1328 = vmatpush3.bf16.msra.mxu1 %v1463_v23  ;;  %v1509_v3 = vld [vmem:[%s1921_s1 + $0x1b8] sm:$0xff]   ;;  %v1518_v10 = vld [vmem:[%s1921_s1 + $0x2c0] sm:$0xff]   ;;  %v1521_v13 = vld [vmem:[%s1921_s1 + $0x208] sm:$0xff]  }
  0x1a   :  { %1329 = vmatprep.subr.bf16.mxu1 %v1466_v26  ;;  %v1514_v7 = vld [vmem:[%s1922_s0 + $0x18] ss:$52 sps:$4 sm:$0xff]   ;;  %v1516_v8 = vld [vmem:[%s1922_s0 + $0x1c] ss:$52 sps:$4 sm:$0xff]   ;;  %v1519_v11 = vld [vmem:[%s1921_s1 + $0x280] sm:$0xff]  }
  0x1b   :  { %1308 = vmatpush3.bf16.msra.mxu0 %v1465_v25  ;;  %v1522_v14 = vld [vmem:[%s1921_s1 + $0x2c8] sm:$0xff]   ;;  %v1524_v16 = vld [vmem:[%s1921_s1 + $0x250] sm:$0xff]   ;;  %v1528_v20 = vld [vmem:[%s1921_s1 + $0x258] sm:$0xff]  }
  0x1c   :  { %1309 = vmatprep.subr.bf16.mxu0 %v1468_v28  ;;  %v1523_v15 = vld [vmem:[%s1921_s1 + $0x288] sm:$0xff]   ;;  %v1525_v17 = vld [vmem:[%s1921_s1 + $0x210] sm:$0xff]   ;;  %v1529_v21 = vld [vmem:[%s1921_s1 + $0x218] sm:$0xff]  }
  0x1d   :  { %1330 = vmatpush3.bf16.msra.mxu1 %v1467_v27  ;;  %v1526_v18 = vld [vmem:[%s1921_s1 + $0x2d0] sm:$0xff]   ;;  %v1530_v22 = vld [vmem:[%s1921_s1 + $0x2d8] sm:$0xff]   ;;  %v1532_v24 = vld [vmem:[%s1921_s1 + $0x260] sm:$0xff]  }
  0x1e   :  { %1331 = vmatprep.subr.bf16.mxu1 %v1470_v30  ;;  %v1527_v19 = vld [vmem:[%s1921_s1 + $0x290] sm:$0xff]   ;;  %v1531_v23 = vld [vmem:[%s1921_s1 + $0x298] sm:$0xff]   ;;  %v1533_v25 = vld [vmem:[%s1921_s1 + $0x220] sm:$0xff]  }
  0x1f   :  { %1310 = vmatpush3.bf16.msra.mxu0 %v1469_v29  ;;  %v1534_v26 = vld [vmem:[%s1921_s1 + $0x2e0] sm:$0xff]   ;;  %v1536_v28 = vld [vmem:[%s1921_s1 + $0x268] sm:$0xff]   ;;  %v1541_v33 = vld [vmem:[%s1921_s1 + $0x230] sm:$0xff]  }
  0x20   :  { %1339 = vmatprep.subr.bf16.mxu0 %v1475_v34  ;;  %v1535_v27 = vld [vmem:[%s1921_s1 + $0x2a0] sm:$0xff]   ;;  %v1537_v29 = vld [vmem:[%s1921_s1 + $0x228] sm:$0xff]   ;;  %v1542_v34 = vld [vmem:[%s1921_s1 + $0x2f0] sm:$0xff]  }
  0x21   :  { %1332 = vmatpush3.bf16.msra.mxu1 %v1471_v31  ;;  %v1538_v30 = vld [vmem:[%s1921_s1 + $0x2e8] sm:$0xff]   ;;  %v1544_v36 = vld [vmem:[%s1921_s1 + $0x278] sm:$0xff]  }
  0x22   :  { %922 = vmatmul.mubr.bf16.vlgmr.msra.gmra.mrb[0].mxu0 %v1472_v32  ;;  %1361 = vmatprep.subr.bf16.mxu1 %v1480_v38  ;;  %v1539_v31 = vld [vmem:[%s1921_s1 + $0x2a8] sm:$0xff]   ;;  %v1540_v32 = vld [vmem:[%s1921_s1 + $0x270] sm:$0xff]   ;;  %v1546_v38 = vld [vmem:[%s1921_s1 + $0x2f8] sm:$0xff]  }
  0x23   :  { %1340 = vmatpush3.bf16.msra.mxu0 %v1479_v37  ;;  %1003 = vmatprep.mubr.bf16.mxu0 %v1512_v5  ;;  %v1545_v37 = vld [vmem:[%s1921_s1 + $0x238] sm:$0xff]  }
  0x24   :  { %963 = vmatmul.mubr.bf16.vlgmr.msra.gmra.mrb[0].mxu1 %v1476_v35  ;;  %1341 = vmatprep.subr.bf16.mxu0 %v1482_v40  ;;  %v1543_v35 = vld [vmem:[%s1921_s1 + $0x2b0] sm:$0xff]  }
  0x25   :  { %1362 = vmatpush3.bf16.msra.mxu1 %v1481_v39  ;;  %1044 = vmatprep.mubr.bf16.mxu1 %v1516_v8  ;;  %v1547_v39 = vld [vmem:[%s1921_s1 + $0x2b8] sm:$0xff]   ;;  %v1548_v40 = vld [vmem:[%s1922_s0 + $0x20] ss:$52 sps:$4 sm:$0xff]  }
  0x26   :  { %1363 = vmatprep.subr.bf16.mxu1 %v1484_v42  ;;  %v1557_v42 = vmov 0.0  }
  0x27   :  { %1342 = vmatpush3.bf16.msra.mxu0 %v1483_v41  ;;  %v1550_v41 = vld [vmem:[%s1922_s0 + $0x24] ss:$52 sps:$4 sm:$0xff]  }
  0x28   :  { %1343 = vmatprep.subr.bf16.mxu0 %v1486_v44  ;;  %v1553_v44 = vld [vmem:[%s1922_s0 + $0x2c] ss:$52 sps:$4 sm:$0xff]  }
  0x29   :  { %1364 = vmatpush3.bf16.msra.mxu1 %v1485_v43  ;;  %v1551_v43 = vld [vmem:[%s1922_s0 + $0x28] ss:$52 sps:$4 sm:$0xff]  }
  0x2a   :  { %1365 = vmatprep.subr.bf16.mxu1 %v1488_v46  ;;  %v1555_v46 = vld [vmem:[%s1921_s1 + $0x308] sm:$0xff]  }
  0x2b   :  { %1344 = vmatpush3.bf16.msra.mxu0 %v1487_v45  ;;  %v1554_v45 = vld [vmem:[%s1921_s1 + $0x300] sm:$0xff]  }
  0x2c   :  { %1345 = vmatprep.subr.bf16.mxu0 %v1490_v48 }
  0x2d   :  { %1366 = vmatpush3.bf16.msra.mxu1 %v1489_v47  ;;  %v1556_v47 = vld [vmem:[%s1922_s0 + $0x30] ss:$52 sps:$4 sm:$0xff]  }
  0x2e   :  { %1367 = vmatprep.subr.bf16.mxu1 %v1492_v50 }
  0x2f   :  { %1346 = vmatpush3.bf16.msra.mxu0 %v1491_v49  ;;  %v1182_v49 = vld [vmem:[%s1923_s2] ss:$0 sm:$0xff] }
  0x30   :  { %1347 = vmatprep.subr.bf16.mxu0 %v1494_v52 }
  0x31   :  { %1368 = vmatpush3.bf16.msra.mxu1 %v1493_v51 }
  0x32   :  { %1369 = vmatprep.subr.bf16.mxu1 %v1496_v54 }
  0x33   :  { %1348 = vmatpush3.bf16.msra.mxu0 %v1495_v53 }
  0x34   :  { %1349 = vmatprep.subr.bf16.mxu0 %v1498_v56 }
  0x35   :  { %1370 = vmatpush3.bf16.msra.mxu1 %v1497_v55 }
  0x36   :  { %1371 = vmatprep.subr.bf16.mxu1 %v1500_v58 }
  0x37   :  { %1350 = vmatpush3.bf16.msra.mxu0 %v1499_v57 }
  0x38   :  { %1351 = vmatprep.subr.bf16.mxu0 %v1502_v60 }
  0x39   :  { %1372 = vmatpush3.bf16.msra.mxu1 %v1501_v59 }
  0x3a   :  { %1373 = vmatprep.subr.bf16.mxu1 %v1504_v62 }
  0x3b   :  { %1352 = vmatpush3.bf16.msra.mxu0 %v1503_v61 }
  0x3c   :  { %1353 = vmatprep.subr.bf16.mxu0 %v1506_v0 }
  0x3d   :  { %1374 = vmatpush3.bf16.msra.mxu1 %v1505_v63 }
  0x3e   :  { %1375 = vmatprep.subr.bf16.mxu1 %v1508_v2 }
  0x3f   :  { %1354 = vmatpush3.bf16.msra.mxu0 %v1507_v1 }
  0x40   :  { %1383 = vmatprep.subr.bf16.mxu0 %v1513_v6 }
  0x41   :  { %1376 = vmatpush3.bf16.msra.mxu1 %v1509_v3 }
  0x42   :  { %1004 = vmatmul.mubr.bf16.vlgmr.msra.gmra.mrb[4].mxu0 %v1510_v4  ;;  %1405 = vmatprep.subr.bf16.mxu1 %v1518_v10 }
  0x43   :  { %1384 = vmatpush3.bf16.msra.mxu0 %v1517_v9  ;;  %1085 = vmatprep.mubr.bf16.mxu0 %v1550_v41 }
  0x44   :  { %1045 = vmatmul.mubr.bf16.vlgmr.msra.gmra.mrb[4].mxu1 %v1514_v7  ;;  %1385 = vmatprep.subr.bf16.mxu0 %v1520_v12 }
  0x45   :  { %1406 = vmatpush3.bf16.msra.mxu1 %v1519_v11  ;;  %1126 = vmatprep.mubr.bf16.mxu1 %v1553_v44 }
  0x46   :  { %1407 = vmatprep.subr.bf16.mxu1 %v1522_v14 }
  0x47   :  { %1386 = vmatpush3.bf16.msra.mxu0 %v1521_v13 }
  0x48   :  { %1387 = vmatprep.subr.bf16.mxu0 %v1524_v16 }
  0x49   :  { %1408 = vmatpush3.bf16.msra.mxu1 %v1523_v15 }
  0x4a   :  { %1409 = vmatprep.subr.bf16.mxu1 %v1526_v18 }
  0x4b   :  { %1388 = vmatpush3.bf16.msra.mxu0 %v1525_v17 }
  0x4c   :  { %1389 = vmatprep.subr.bf16.mxu0 %v1528_v20 }
  0x4d   :  { %1410 = vmatpush3.bf16.msra.mxu1 %v1527_v19 }
  0x4e   :  { %1411 = vmatprep.subr.bf16.mxu1 %v1530_v22 }
  0x4f   :  { %1390 = vmatpush3.bf16.msra.mxu0 %v1529_v21 }
  0x50   :  { %1391 = vmatprep.subr.bf16.mxu0 %v1532_v24 }
  0x51   :  { %1412 = vmatpush3.bf16.msra.mxu1 %v1531_v23 }
  0x52   :  { %1413 = vmatprep.subr.bf16.mxu1 %v1534_v26 }
  0x53   :  { %1392 = vmatpush3.bf16.msra.mxu0 %v1533_v25 }
  0x54   :  { %1393 = vmatprep.subr.bf16.mxu0 %v1536_v28 }
  0x55   :  { %1414 = vmatpush3.bf16.msra.mxu1 %v1535_v27 }
  0x56   :  { %1415 = vmatprep.subr.bf16.mxu1 %v1538_v30 }
  0x57   :  { %1394 = vmatpush3.bf16.msra.mxu0 %v1537_v29 }
  0x58   :  { %1395 = vmatprep.subr.bf16.mxu0 %v1540_v32 }
  0x59   :  { %1416 = vmatpush3.bf16.msra.mxu1 %v1539_v31 }
  0x5a   :  { %1417 = vmatprep.subr.bf16.mxu1 %v1542_v34 }
  0x5b   :  { %1396 = vmatpush3.bf16.msra.mxu0 %v1541_v33 }
  0x5c   :  { %1397 = vmatprep.subr.bf16.mxu0 %v1544_v36 }
  0x5d   :  { %1418 = vmatpush3.bf16.msra.mxu1 %v1543_v35 }
  0x5e   :  { %1419 = vmatprep.subr.bf16.mxu1 %v1546_v38 }
  0x5f   :  { %1398 = vmatpush3.bf16.msra.mxu0 %v1545_v37 }
  0x60   :  { %1430 = vmatprep.subr.bf16.mxu0 %v1557_v42 }
  0x61   :  { %1420 = vmatpush3.bf16.msra.mxu1 %v1547_v39 }
  0x62   :  { %1086 = vmatmul.mubr.bf16.vlgmr.msra.gmra.mrb[8].mxu0 %v1548_v40 }
  0x63   :  { %1431 = vmatpush3.bf16.msra.mxu0 %v1554_v45  ;;  %1434 = vmatprep.mubr.msk.bf16.mxu0 %vm1558_vm0, %v1557_v42 }
  0x64   :  { %1127 = vmatmul.mubr.bf16.vlgmr.msra.gmra.mrb[8].mxu1 %v1551_v43  ;;  %1432 = vmatprep.subr.bf16.mxu0 %v1557_v42 }
  0x67   :  { %1433 = vmatpush3.bf16.msra.mxu0 %v1555_v46 }
  0x6a   :  { %1435 = vmatmul.mubr.msk.bf16.vlgmr.msra.gmra.mrb[12].mxu0 %vm885_vm1, %v1556_v47 }
  0xf5   :  { %v1311_v48 = vpop.f32.mrb[0].mxu0 }
  0xf6   :  { %v1312_v50 = vpop.f32.mrb[1].mxu0 }
  0xf7   :  { %v1313_v51 = vadd.f32 %v1312_v50, %v1311_v48  ;;  %v1314_v52 = vpop.f32.mrb[2].mxu0  ;;  %v1333_v53 = vpop.f32.mrb[0].mxu1 }
  0xf8   :  { %v1315_v54 = vpop.f32.mrb[3].mxu0  ;;  %v1334_v55 = vpop.f32.mrb[1].mxu1 }
  0xf9   :  { %v924_v56 = vadd.f32 %v1313_v51, %v1182_v49  ;;  %v1316_v57 = vadd.f32 %v1315_v54, %v1314_v52  ;;  %v1335_v58 = vadd.f32 %v1334_v55, %v1333_v53  ;;  %v1336_v59 = vpop.f32.mrb[2].mxu1 }
  0xfa   :  { %v1337_v60 = vpop.f32.mrb[3].mxu1 }
  0xfb   :  { %v927_v61 = vadd.f32 %v1316_v57, %v1182_v49  ;;  %v965_v62 = vadd.f32 %v1335_v58, %v924_v56  ;;  %v1338_v63 = vadd.f32 %v1337_v60, %v1336_v59 }
  0xfd   :  { %v968_v0 = vadd.f32 %v1338_v63, %v927_v61 }
 0x115   :  { %v1355_v1 = vpop.f32.mrb[4].mxu0 }
 0x116   :  { %v1356_v2 = vpop.f32.mrb[5].mxu0 }
 0x117   :  { %v1357_v3 = vadd.f32 %v1356_v2, %v1355_v1  ;;  %v1358_v4 = vpop.f32.mrb[6].mxu0  ;;  %v1377_v5 = vpop.f32.mrb[4].mxu1 }
 0x118   :  { %v1359_v6 = vpop.f32.mrb[7].mxu0  ;;  %v1378_v9 = vpop.f32.mrb[5].mxu1 }
 0x119   :  { %v1006_v7 = vadd.f32 %v1357_v3, %v965_v62  ;;  %v1360_v8 = vadd.f32 %v1359_v6, %v1358_v4  ;;  %v1379_v10 = vadd.f32 %v1378_v9, %v1377_v5  ;;  %v1380_v11 = vpop.f32.mrb[6].mxu1 }
 0x11a   :  { %v1381_v13 = vpop.f32.mrb[7].mxu1 }
 0x11b   :  { %v1009_v12 = vadd.f32 %v1360_v8, %v968_v0  ;;  %v1047_v14 = vadd.f32 %v1379_v10, %v1006_v7  ;;  %v1382_v15 = vadd.f32 %v1381_v13, %v1380_v11 }
 0x11d   :  { %v1050_v16 = vadd.f32 %v1382_v15, %v1009_v12 }
 0x135   :  { %v1399_v17 = vpop.f32.mrb[8].mxu0 }
 0x136   :  { %v1400_v18 = vpop.f32.mrb[9].mxu0 }
 0x137   :  { %v1421_v19 = vpop.f32.mrb[8].mxu1  ;;  %v1401_v20 = vadd.f32 %v1400_v18, %v1399_v17  ;;  %v1402_v21 = vpop.f32.mrb[10].mxu0 }
 0x138   :  { %v1422_v22 = vpop.f32.mrb[9].mxu1  ;;  %v1403_v24 = vpop.f32.mrb[11].mxu0 }
 0x139   :  { %v1423_v23 = vadd.f32 %v1422_v22, %v1421_v19  ;;  %v1424_v25 = vpop.f32.mrb[10].mxu1  ;;  %v1088_v26 = vadd.f32 %v1401_v20, %v1047_v14  ;;  %v1404_v27 = vadd.f32 %v1403_v24, %v1402_v21 }
 0x13a   :  { %v1425_v28 = vpop.f32.mrb[11].mxu1 }
 0x13b   :  { %v1426_v29 = vadd.f32 %v1425_v28, %v1424_v25  ;;  %v1091_v30 = vadd.f32 %v1404_v27, %v1050_v16  ;;  %v1129_v31 = vadd.f32 %v1423_v23, %v1088_v26 }
 0x13d   :  { %v1169_v32 = vpop.f32.mrb[12].mxu0  ;;  %v1132_v33 = vadd.f32 %v1426_v29, %v1091_v30 }
 0x13e   :  { %v1170_v34 = vadd.f32 %v1169_v32, %v1129_v31  ;;  %v1436_v35 = vpop.f32.mrb[13].mxu0 }
 0x13f   :  { %v1172_v36 = vpop.f32.mrb[14].mxu0 }
 0x140   :  { %1176 = vst [vmem:[%s1924_s3] sm:$0xff] %v1170_v34  ;;  %v1173_v37 = vadd.f32 %v1172_v36, %v1132_v33  ;;  %v1437_v38 = vpop.f32.mrb[15].mxu0 }
 0x142   :  { %1177 = vst [vmem:[%s1924_s3 + $0x8] sm:$0xff] %v1173_v37 }

</bundles_post_ra>
